<compile_context>
chip_gen: v5e
topology: v5e:2x2
jax: 0.10.0
libtpu: 0.0.40
codegen_flags: <defaults>
</compile_context>

<pallas_src>
import numpy as np
import jax
import jax.numpy as jnp
from jax import lax
from jax.experimental import pallas as pl
from jax.experimental.pallas import tpu as pltpu


# ----------------------------------------------------------------------------
# helpers
# ----------------------------------------------------------------------------
def _choose_nb(n, cap=8):
    """Images per grid step: as many as possible (<= cap) while keeping >= 2
    grid steps so both v7x TensorCores get work."""
    divs = [d for d in range(1, min(n, cap) + 1) if n % d == 0]
    multi = [d for d in divs if n // d >= 2]
    return max(multi) if multi else max(divs)


def _shift_lanes(x, s):
    """result[..., j] = x[..., (j + s) % n]  (circular lane shift; any value that
    wraps across an image boundary is zeroed by the conv masks / never read by
    the pools).  Built from two static slices + concat, which lowers to cheap
    lane rotations."""
    n = x.shape[-1]
    a = s % n
    if a == 0:
        return x
    return jnp.concatenate([x[..., a:], x[..., :a]], axis=-1)


def _build_consts(H, W, NB, Q):
    """Boundary masks for the two convolutions and the 0/1 feature-selection
    matrix for the linear layer (depend only on static shapes)."""
    HW = H * W
    yy, xx = np.arange(HW) // W, np.arange(HW) % W
    m1 = np.zeros((9, 1, HW), np.float32)
    m2 = np.zeros((9, 1, HW), np.float32)
    for t in range(9):
        dy, dx = divmod(t, 3)
        sy, sx = yy + dy - 1, xx + dx - 1
        m1[t, 0] = (sy >= 0) & (sy < H) & (sx >= 0) & (sx < W)
        sy2, sx2 = yy // 2 + dy - 1, xx // 2 + dx - 1
        m2[t, 0] = (sy2 >= 0) & (sy2 < H // 2) & (sx2 >= 0) & (sx2 < W // 2)
    m1 = np.tile(m1, (1, 1, NB))
    m2 = np.tile(m2, (1, 1, NB))
    H4, W4 = H // 4, W // 4
    scols = max(128, ((Q * NB + 127) // 128) * 128)
    sel = np.zeros((NB * HW, scols), np.float32)
    for b in range(NB):
        for qy in range(H4):
            for qx in range(W4):
                q = qy * W4 + qx
                sel[b * HW + (4 * qy) * W + 4 * qx, q * NB + b] = 1.0
    return jnp.asarray(m1), jnp.asarray(m2), jnp.asarray(sel), scols


# ----------------------------------------------------------------------------
# fused forward kernel (NB images per grid step)
# ----------------------------------------------------------------------------
def _make_kernel(H, W, NB, Q):
    HW = H * W

    def kernel(x_ref, m1_ref, m2_ref, w1_ref, b1_ref, w2_ref, b2_ref,
               sel_ref, wl_ref, bl_ref, out_ref):
        # ---- layer 1: 3x3 conv (BN scale folded into weights) + bias + ReLU ---
        x = x_ref[...]                                          # (C0p, NB*H*W)
        acc1 = None
        for t in range(9):
            dy, dx = divmod(t, 3)
            s = (dy - 1) * W + (dx - 1)
            xm = x if s == 0 else _shift_lanes(x, s) * m1_ref[t]
            term = jnp.dot(w1_ref[t], xm, preferred_element_type=jnp.float32)
            acc1 = term if acc1 is None else acc1 + term
        y1 = jnp.maximum(acc1 + b1_ref[...], 0.0)               # (C1, NB*H*W)

        # ---- 2x2 max-pool: results live in place on the stride-2 lane grid ----
        t1 = jnp.maximum(y1, _shift_lanes(y1, 1))
        p1 = jnp.maximum(t1, _shift_lanes(t1, W))

        # ---- layer 2: 3x3 conv on the dilated grid + bias + ReLU --------------
        acc2 = None
        for t in range(9):
            dy, dx = divmod(t, 3)
            s = 2 * ((dy - 1) * W + (dx - 1))
            xm = p1 if s == 0 else _shift_lanes(p1, s) * m2_ref[t]
            term = jnp.dot(w2_ref[t], xm, preferred_element_type=jnp.float32)
            acc2 = term if acc2 is None else acc2 + term
        y2 = jnp.maximum(acc2 + b2_ref[...], 0.0)               # (C2, NB*H*W)

        # ---- 2x2 max-pool: results on the stride-4 lane grid ------------------
        u1 = jnp.maximum(y2, _shift_lanes(y2, 2))
        feat = jnp.maximum(u1, _shift_lanes(u1, 2 * W))         # (C2, NB*H*W)

        # ---- gather the Q*NB pooled feature columns with one selection matmul -
        fc = jnp.dot(feat, sel_ref[...], preferred_element_type=jnp.float32)
        fcT = fc.T                                              # (SCOLS, C2)

        # ---- linear layer: accumulate over the Q pooled spatial positions -----
        accf = None
        for q in range(Q):
            rows = fcT[q * NB:(q + 1) * NB, :]                  # (NB, C2)
            term = jnp.dot(rows, wl_ref[q], preferred_element_type=jnp.float32)
            accf = term if accf is None else accf + term
        out_ref[0] = (accf + bl_ref[...]).astype(out_ref.dtype)  # (NB, LP)

    return kernel


@jax.jit
def cnn_forward(x_nchw, params):
    N, C0, H, W = x_nchw.shape
    assert H % 4 == 0 and W % 4 == 0 and (H * W) % 128 == 0, \
        "spatial dims must be multiples of 4 with H*W a multiple of 128"
    HW = H * W
    C0P = params["w1k"].shape[2]
    C1 = params["b1k"].shape[0]
    C2 = params["b2k"].shape[0]
    Q = params["wlk"].shape[0]
    LP = params["blk"].shape[1]
    L_out = params["bl"].shape[1]
    assert Q == (H // 4) * (W // 4) and C0 <= C0P

    NB = _choose_nb(N)
    G = N // NB
    m1, m2, sel, scols = _build_consts(H, W, NB, Q)

    # single cheap relayout of the (tiny) input: (N,C,H,W) -> (C0p, N*H*W)
    x = jnp.transpose(x_nchw.reshape(N, C0, HW), (1, 0, 2)).reshape(C0, N * HW)
    x = jnp.pad(x.astype(jnp.float32), ((0, C0P - C0), (0, 0)))

    kernel = _make_kernel(H, W, NB, Q)
    out = pl.pallas_call(
        kernel,
        out_shape=jax.ShapeDtypeStruct((G, NB, LP), jnp.float32),
        grid_spec=pltpu.PrefetchScalarGridSpec(
            num_scalar_prefetch=0,
            grid=(G,),
            in_specs=[
                pl.BlockSpec((C0P, NB * HW), lambda g: (0, g)),
                pl.BlockSpec((9, 1, NB * HW), lambda g: (0, 0, 0)),
                pl.BlockSpec((9, 1, NB * HW), lambda g: (0, 0, 0)),
                pl.BlockSpec((9, C1, C0P), lambda g: (0, 0, 0)),
                pl.BlockSpec((C1, 1), lambda g: (0, 0)),
                pl.BlockSpec((9, C2, C1), lambda g: (0, 0, 0)),
                pl.BlockSpec((C2, 1), lambda g: (0, 0)),
                pl.BlockSpec((NB * HW, scols), lambda g: (0, 0)),
                pl.BlockSpec((Q, C2, LP), lambda g: (0, 0, 0)),
                pl.BlockSpec((1, LP), lambda g: (0, 0)),
            ],
            out_specs=pl.BlockSpec((1, NB, LP), lambda g: (g, 0, 0)),
        ),
        compiler_params=pltpu.CompilerParams(
            dimension_semantics=("parallel",)),
    )(x, m1, m2, params["w1k"], params["b1k"], params["w2k"], params["b2k"],
      sel, params["wlk"], params["blk"])

    return out.reshape(N, LP)[:, :L_out]


# ----------------------------------------------------------------------------
# deterministic parameter construction (+ kernel-ready folded forms)
# ----------------------------------------------------------------------------
def init_params(key, size, c1, c2, label_size):
    eps = 1e-5
    ks = jax.random.split(key, 10)
    c0, c0p = 3, 8
    # layer1: Conv(3->c1, 3x3, pad=1) + BN(c1)
    w1 = 0.1 * jax.random.normal(ks[0], (3, 3, c0, c1), jnp.float32)     # HWIO
    cb1 = 0.1 * jax.random.normal(ks[1], (c1,), jnp.float32)
    g1 = 1.0 + 0.1 * jax.random.normal(ks[2], (c1,), jnp.float32)
    be1 = 0.1 * jax.random.normal(ks[3], (c1,), jnp.float32)
    # layer2: Conv(c1->c2, 3x3, pad=1) + BN(c2)
    w2 = 0.1 * jax.random.normal(ks[4], (3, 3, c1, c2), jnp.float32)
    cb2 = 0.1 * jax.random.normal(ks[5], (c2,), jnp.float32)
    g2 = 1.0 + 0.1 * jax.random.normal(ks[6], (c2,), jnp.float32)
    be2 = 0.1 * jax.random.normal(ks[7], (c2,), jnp.float32)
    # layer3: Linear((size//4)^2 * c2 -> label_size), rows in PyTorch NCHW order
    s4 = size // 4
    q = s4 * s4
    feat = q * c2
    wl = 0.05 * jax.random.normal(ks[8], (feat, label_size), jnp.float32)
    bl = 0.05 * jax.random.normal(ks[9], (1, label_size), jnp.float32)

    # --- kernel-ready tensors (offline preprocessing) ---
    scale1 = g1 / jnp.sqrt(1.0 + eps)           # eval-mode BN fold (mean=0,var=1)
    scale2 = g2 / jnp.sqrt(1.0 + eps)
    w1m = jnp.transpose(w1, (0, 1, 3, 2)).reshape(9, c1, c0) * scale1[None, :, None]
    w1k = jnp.zeros((9, c1, c0p), jnp.float32).at[:, :, :c0].set(w1m)
    b1k = (cb1 * scale1 + be1).reshape(c1, 1)
    w2k = jnp.transpose(w2, (0, 1, 3, 2)).reshape(9, c2, c1) * scale2[None, :, None]
    b2k = (cb2 * scale2 + be2).reshape(c2, 1)
    lp = ((label_size + 127) // 128) * 128
    # FC weight reordered to (pooled position, channel, label); lane-padded
    wlk = jnp.zeros((q, c2, lp), jnp.float32).at[:, :, :label_size].set(
        wl.reshape(c2, q, label_size).transpose(1, 0, 2))
    blk = jnp.zeros((1, lp), jnp.float32).at[:, :label_size].set(bl)

    return {
        # canonical parameters (used by the pure-JAX reference)
        "w1_hwio": w1, "cb1": cb1, "g1": g1, "be1": be1,
        "w2_hwio": w2, "cb2": cb2, "g2": g2, "be2": be2,
        "wl": wl, "bl": bl,
        # kernel-ready parameters
        "w1k": w1k, "b1k": b1k, "w2k": w2k, "b2k": b2k,
        "wlk": wlk, "blk": blk,
    }


# Pure-JAX reference (PyTorch semantics, eval-mode BN) for the correctness check.
def cnn_forward_ref(x_nchw, params):
    eps = 1e-5
    x = jnp.transpose(x_nchw, (0, 2, 3, 1))

    def layer(h, w_hwio, cb, gamma, beta):
        y = lax.conv_general_dilated(
            h, w_hwio, window_strides=(1, 1), padding="SAME",
            dimension_numbers=("NHWC", "HWIO", "NHWC"))
        y = y + cb.reshape(1, 1, 1, -1)
        y = (gamma.reshape(1, 1, 1, -1) * y / jnp.sqrt(1.0 + eps)
             + beta.reshape(1, 1, 1, -1))
        y = jnp.maximum(y, 0.0)
        return lax.reduce_window(y, -jnp.inf, lax.max,
                                 (1, 2, 2, 1), (1, 2, 2, 1), "VALID")

    h1 = layer(x, params["w1_hwio"], params["cb1"], params["g1"], params["be1"])
    h2 = layer(h1, params["w2_hwio"], params["cb2"], params["g2"], params["be2"])
    flat = jnp.transpose(h2, (0, 3, 1, 2)).reshape(h2.shape[0], -1)  # NCHW flatten
    return flat @ params["wl"] + params["bl"]


if __name__ == "__main__":
    size, c1, c2, label_size = 16, 8, 8, 10
    batch = 2

    key = jax.random.PRNGKey(0)
    kx, kp = jax.random.split(key)
    x = jax.random.normal(kx, (batch, 3, size, size), jnp.float32)   # NCHW
    params = init_params(kp, size, c1, c2, label_size)

    out = jax.block_until_ready(cnn_forward(x, params))
    assert out.shape == (batch, label_size), out.shape

    ref = jax.block_until_ready(cnn_forward_ref(x, params))
    assert jnp.allclose(out, ref, atol=1e-3, rtol=1e-3), \
        float(jnp.max(jnp.abs(out - ref)))

    print("KERNEL_OK")
</pallas_src>

<mosaic_0001>
module attributes {stable_mosaic.version = 11 : i64} {
  func.func @kernel(%arg0: i32, %arg1: memref<8x256xf32, #tpu.memory_space<vmem>>, %arg2: memref<9x1x256xf32, #tpu.memory_space<vmem>>, %arg3: memref<9x1x256xf32, #tpu.memory_space<vmem>>, %arg4: memref<9x8x8xf32, #tpu.memory_space<vmem>>, %arg5: memref<8x1xf32, #tpu.memory_space<vmem>>, %arg6: memref<9x8x8xf32, #tpu.memory_space<vmem>>, %arg7: memref<8x1xf32, #tpu.memory_space<vmem>>, %arg8: memref<256x128xf32, #tpu.memory_space<vmem>>, %arg9: memref<16x8x128xf32, #tpu.memory_space<vmem>>, %arg10: memref<1x128xf32, #tpu.memory_space<vmem>>, %arg11: memref<1x1x128xf32, #tpu.memory_space<vmem>>) attributes {dimension_semantics = [#tpu.dimension_semantics<parallel>], iteration_bounds = array<i64: 2>, scalar_prefetch = 0 : i64, scratch_operands = 0 : i64, tpu.core_type = #tpu.core_type<tc>, window_params = [{transform_indices = @transform_0, window_bounds = array<i64: 8, 256>}, {pipeline_mode = #tpu.pipeline_mode<synchronous>, transform_indices = @transform_1, window_bounds = array<i64: 9, 1, 256>}, {pipeline_mode = #tpu.pipeline_mode<synchronous>, transform_indices = @transform_2, window_bounds = array<i64: 9, 1, 256>}, {pipeline_mode = #tpu.pipeline_mode<synchronous>, transform_indices = @transform_3, window_bounds = array<i64: 9, 8, 8>}, {pipeline_mode = #tpu.pipeline_mode<synchronous>, transform_indices = @transform_4, window_bounds = array<i64: 8, 1>}, {pipeline_mode = #tpu.pipeline_mode<synchronous>, transform_indices = @transform_5, window_bounds = array<i64: 9, 8, 8>}, {pipeline_mode = #tpu.pipeline_mode<synchronous>, transform_indices = @transform_6, window_bounds = array<i64: 8, 1>}, {pipeline_mode = #tpu.pipeline_mode<synchronous>, transform_indices = @transform_7, window_bounds = array<i64: 256, 128>}, {pipeline_mode = #tpu.pipeline_mode<synchronous>, transform_indices = @transform_8, window_bounds = array<i64: 16, 8, 128>}, {pipeline_mode = #tpu.pipeline_mode<synchronous>, transform_indices = @transform_9, window_bounds = array<i64: 1, 128>}, {transform_indices = @transform_10, window_bounds = array<i64: 1, 1, 128>}]} {
    %c0 = arith.constant 0 : index
    %c0_0 = arith.constant 0 : index
    %0 = vector.load %arg1[%c0, %c0_0] : memref<8x256xf32, #tpu.memory_space<vmem>>, vector<8x256xf32>
    %1 = vector.extract_strided_slice %0 {offsets = [0, 239], sizes = [8, 17], strides = [1, 1]} : vector<8x256xf32> to vector<8x17xf32>
    %2 = vector.extract_strided_slice %0 {offsets = [0, 0], sizes = [8, 239], strides = [1, 1]} : vector<8x256xf32> to vector<8x239xf32>
    %3 = tpu.concatenate %1, %2 in 1 : vector<8x17xf32>, vector<8x239xf32> -> vector<8x256xf32>
    %c0_1 = arith.constant 0 : index
    %c0_2 = arith.constant 0 : index
    %c0_3 = arith.constant 0 : index
    %4 = vector.load %arg2[%c0_1, %c0_2, %c0_3] : memref<9x1x256xf32, #tpu.memory_space<vmem>>, vector<1x1x256xf32>
    %5 = vector.shape_cast %4 : vector<1x1x256xf32> to vector<1x256xf32>
    %6 = vector.broadcast %5 : vector<1x256xf32> to vector<8x256xf32>
    %7 = arith.mulf %3, %6 : vector<8x256xf32>
    %c0_4 = arith.constant 0 : index
    %c0_5 = arith.constant 0 : index
    %c0_6 = arith.constant 0 : index
    %8 = vector.load %arg4[%c0_4, %c0_5, %c0_6] : memref<9x8x8xf32, #tpu.memory_space<vmem>>, vector<1x8x8xf32>
    %9 = vector.shape_cast %8 : vector<1x8x8xf32> to vector<8x8xf32>
    %cst = arith.constant dense<0.000000e+00> : vector<8x256xf32>
    %10 = tpu.matmul %9, %7, %cst {dimension_numbers = #tpu.dot_dimension_numbers<[1], [0], [0], [1], [0, 0, 1, 1], [], []>} : vector<8x8xf32>, vector<8x256xf32>, vector<8x256xf32> -> vector<8x256xf32>
    %11 = vector.extract_strided_slice %0 {offsets = [0, 240], sizes = [8, 16], strides = [1, 1]} : vector<8x256xf32> to vector<8x16xf32>
    %12 = vector.extract_strided_slice %0 {offsets = [0, 0], sizes = [8, 240], strides = [1, 1]} : vector<8x256xf32> to vector<8x240xf32>
    %13 = tpu.concatenate %11, %12 in 1 : vector<8x16xf32>, vector<8x240xf32> -> vector<8x256xf32>
    %c1 = arith.constant 1 : index
    %c0_7 = arith.constant 0 : index
    %c0_8 = arith.constant 0 : index
    %14 = vector.load %arg2[%c1, %c0_7, %c0_8] : memref<9x1x256xf32, #tpu.memory_space<vmem>>, vector<1x1x256xf32>
    %15 = vector.shape_cast %14 : vector<1x1x256xf32> to vector<1x256xf32>
    %16 = vector.broadcast %15 : vector<1x256xf32> to vector<8x256xf32>
    %17 = arith.mulf %13, %16 : vector<8x256xf32>
    %c1_9 = arith.constant 1 : index
    %c0_10 = arith.constant 0 : index
    %c0_11 = arith.constant 0 : index
    %18 = vector.load %arg4[%c1_9, %c0_10, %c0_11] : memref<9x8x8xf32, #tpu.memory_space<vmem>>, vector<1x8x8xf32>
    %19 = vector.shape_cast %18 : vector<1x8x8xf32> to vector<8x8xf32>
    %cst_12 = arith.constant dense<0.000000e+00> : vector<8x256xf32>
    %20 = tpu.matmul %19, %17, %cst_12 {dimension_numbers = #tpu.dot_dimension_numbers<[1], [0], [0], [1], [0, 0, 1, 1], [], []>} : vector<8x8xf32>, vector<8x256xf32>, vector<8x256xf32> -> vector<8x256xf32>
    %21 = arith.addf %10, %20 : vector<8x256xf32>
    %22 = vector.extract_strided_slice %0 {offsets = [0, 241], sizes = [8, 15], strides = [1, 1]} : vector<8x256xf32> to vector<8x15xf32>
    %23 = vector.extract_strided_slice %0 {offsets = [0, 0], sizes = [8, 241], strides = [1, 1]} : vector<8x256xf32> to vector<8x241xf32>
    %24 = tpu.concatenate %22, %23 in 1 : vector<8x15xf32>, vector<8x241xf32> -> vector<8x256xf32>
    %c2 = arith.constant 2 : index
    %c0_13 = arith.constant 0 : index
    %c0_14 = arith.constant 0 : index
    %25 = vector.load %arg2[%c2, %c0_13, %c0_14] : memref<9x1x256xf32, #tpu.memory_space<vmem>>, vector<1x1x256xf32>
    %26 = vector.shape_cast %25 : vector<1x1x256xf32> to vector<1x256xf32>
    %27 = vector.broadcast %26 : vector<1x256xf32> to vector<8x256xf32>
    %28 = arith.mulf %24, %27 : vector<8x256xf32>
    %c2_15 = arith.constant 2 : index
    %c0_16 = arith.constant 0 : index
    %c0_17 = arith.constant 0 : index
    %29 = vector.load %arg4[%c2_15, %c0_16, %c0_17] : memref<9x8x8xf32, #tpu.memory_space<vmem>>, vector<1x8x8xf32>
    %30 = vector.shape_cast %29 : vector<1x8x8xf32> to vector<8x8xf32>
    %cst_18 = arith.constant dense<0.000000e+00> : vector<8x256xf32>
    %31 = tpu.matmul %30, %28, %cst_18 {dimension_numbers = #tpu.dot_dimension_numbers<[1], [0], [0], [1], [0, 0, 1, 1], [], []>} : vector<8x8xf32>, vector<8x256xf32>, vector<8x256xf32> -> vector<8x256xf32>
    %32 = arith.addf %21, %31 : vector<8x256xf32>
    %33 = vector.extract_strided_slice %0 {offsets = [0, 255], sizes = [8, 1], strides = [1, 1]} : vector<8x256xf32> to vector<8x1xf32>
    %34 = vector.extract_strided_slice %0 {offsets = [0, 0], sizes = [8, 255], strides = [1, 1]} : vector<8x256xf32> to vector<8x255xf32>
    %35 = tpu.concatenate %33, %34 in 1 : vector<8x1xf32>, vector<8x255xf32> -> vector<8x256xf32>
    %c3 = arith.constant 3 : index
    %c0_19 = arith.constant 0 : index
    %c0_20 = arith.constant 0 : index
    %36 = vector.load %arg2[%c3, %c0_19, %c0_20] : memref<9x1x256xf32, #tpu.memory_space<vmem>>, vector<1x1x256xf32>
    %37 = vector.shape_cast %36 : vector<1x1x256xf32> to vector<1x256xf32>
    %38 = vector.broadcast %37 : vector<1x256xf32> to vector<8x256xf32>
    %39 = arith.mulf %35, %38 : vector<8x256xf32>
    %c3_21 = arith.constant 3 : index
    %c0_22 = arith.constant 0 : index
    %c0_23 = arith.constant 0 : index
    %40 = vector.load %arg4[%c3_21, %c0_22, %c0_23] : memref<9x8x8xf32, #tpu.memory_space<vmem>>, vector<1x8x8xf32>
    %41 = vector.shape_cast %40 : vector<1x8x8xf32> to vector<8x8xf32>
    %cst_24 = arith.constant dense<0.000000e+00> : vector<8x256xf32>
    %42 = tpu.matmul %41, %39, %cst_24 {dimension_numbers = #tpu.dot_dimension_numbers<[1], [0], [0], [1], [0, 0, 1, 1], [], []>} : vector<8x8xf32>, vector<8x256xf32>, vector<8x256xf32> -> vector<8x256xf32>
    %43 = arith.addf %32, %42 : vector<8x256xf32>
    %c4 = arith.constant 4 : index
    %c0_25 = arith.constant 0 : index
    %c0_26 = arith.constant 0 : index
    %44 = vector.load %arg4[%c4, %c0_25, %c0_26] : memref<9x8x8xf32, #tpu.memory_space<vmem>>, vector<1x8x8xf32>
    %45 = vector.shape_cast %44 : vector<1x8x8xf32> to vector<8x8xf32>
    %cst_27 = arith.constant dense<0.000000e+00> : vector<8x256xf32>
    %46 = tpu.matmul %45, %0, %cst_27 {dimension_numbers = #tpu.dot_dimension_numbers<[1], [0], [0], [1], [0, 0, 1, 1], [], []>} : vector<8x8xf32>, vector<8x256xf32>, vector<8x256xf32> -> vector<8x256xf32>
    %47 = arith.addf %43, %46 : vector<8x256xf32>
    %48 = vector.extract_strided_slice %0 {offsets = [0, 1], sizes = [8, 255], strides = [1, 1]} : vector<8x256xf32> to vector<8x255xf32>
    %49 = vector.extract_strided_slice %0 {offsets = [0, 0], sizes = [8, 1], strides = [1, 1]} : vector<8x256xf32> to vector<8x1xf32>
    %50 = tpu.concatenate %48, %49 in 1 : vector<8x255xf32>, vector<8x1xf32> -> vector<8x256xf32>
    %c5 = arith.constant 5 : index
    %c0_28 = arith.constant 0 : index
    %c0_29 = arith.constant 0 : index
    %51 = vector.load %arg2[%c5, %c0_28, %c0_29] : memref<9x1x256xf32, #tpu.memory_space<vmem>>, vector<1x1x256xf32>
    %52 = vector.shape_cast %51 : vector<1x1x256xf32> to vector<1x256xf32>
    %53 = vector.broadcast %52 : vector<1x256xf32> to vector<8x256xf32>
    %54 = arith.mulf %50, %53 : vector<8x256xf32>
    %c5_30 = arith.constant 5 : index
    %c0_31 = arith.constant 0 : index
    %c0_32 = arith.constant 0 : index
    %55 = vector.load %arg4[%c5_30, %c0_31, %c0_32] : memref<9x8x8xf32, #tpu.memory_space<vmem>>, vector<1x8x8xf32>
    %56 = vector.shape_cast %55 : vector<1x8x8xf32> to vector<8x8xf32>
    %cst_33 = arith.constant dense<0.000000e+00> : vector<8x256xf32>
    %57 = tpu.matmul %56, %54, %cst_33 {dimension_numbers = #tpu.dot_dimension_numbers<[1], [0], [0], [1], [0, 0, 1, 1], [], []>} : vector<8x8xf32>, vector<8x256xf32>, vector<8x256xf32> -> vector<8x256xf32>
    %58 = arith.addf %47, %57 : vector<8x256xf32>
    %59 = vector.extract_strided_slice %0 {offsets = [0, 15], sizes = [8, 241], strides = [1, 1]} : vector<8x256xf32> to vector<8x241xf32>
    %60 = vector.extract_strided_slice %0 {offsets = [0, 0], sizes = [8, 15], strides = [1, 1]} : vector<8x256xf32> to vector<8x15xf32>
    %61 = tpu.concatenate %59, %60 in 1 : vector<8x241xf32>, vector<8x15xf32> -> vector<8x256xf32>
    %c6 = arith.constant 6 : index
    %c0_34 = arith.constant 0 : index
    %c0_35 = arith.constant 0 : index
    %62 = vector.load %arg2[%c6, %c0_34, %c0_35] : memref<9x1x256xf32, #tpu.memory_space<vmem>>, vector<1x1x256xf32>
    %63 = vector.shape_cast %62 : vector<1x1x256xf32> to vector<1x256xf32>
    %64 = vector.broadcast %63 : vector<1x256xf32> to vector<8x256xf32>
    %65 = arith.mulf %61, %64 : vector<8x256xf32>
    %c6_36 = arith.constant 6 : index
    %c0_37 = arith.constant 0 : index
    %c0_38 = arith.constant 0 : index
    %66 = vector.load %arg4[%c6_36, %c0_37, %c0_38] : memref<9x8x8xf32, #tpu.memory_space<vmem>>, vector<1x8x8xf32>
    %67 = vector.shape_cast %66 : vector<1x8x8xf32> to vector<8x8xf32>
    %cst_39 = arith.constant dense<0.000000e+00> : vector<8x256xf32>
    %68 = tpu.matmul %67, %65, %cst_39 {dimension_numbers = #tpu.dot_dimension_numbers<[1], [0], [0], [1], [0, 0, 1, 1], [], []>} : vector<8x8xf32>, vector<8x256xf32>, vector<8x256xf32> -> vector<8x256xf32>
    %69 = arith.addf %58, %68 : vector<8x256xf32>
    %70 = vector.extract_strided_slice %0 {offsets = [0, 16], sizes = [8, 240], strides = [1, 1]} : vector<8x256xf32> to vector<8x240xf32>
    %71 = vector.extract_strided_slice %0 {offsets = [0, 0], sizes = [8, 16], strides = [1, 1]} : vector<8x256xf32> to vector<8x16xf32>
    %72 = tpu.concatenate %70, %71 in 1 : vector<8x240xf32>, vector<8x16xf32> -> vector<8x256xf32>
    %c7 = arith.constant 7 : index
    %c0_40 = arith.constant 0 : index
    %c0_41 = arith.constant 0 : index
    %73 = vector.load %arg2[%c7, %c0_40, %c0_41] : memref<9x1x256xf32, #tpu.memory_space<vmem>>, vector<1x1x256xf32>
    %74 = vector.shape_cast %73 : vector<1x1x256xf32> to vector<1x256xf32>
    %75 = vector.broadcast %74 : vector<1x256xf32> to vector<8x256xf32>
    %76 = arith.mulf %72, %75 : vector<8x256xf32>
    %c7_42 = arith.constant 7 : index
    %c0_43 = arith.constant 0 : index
    %c0_44 = arith.constant 0 : index
    %77 = vector.load %arg4[%c7_42, %c0_43, %c0_44] : memref<9x8x8xf32, #tpu.memory_space<vmem>>, vector<1x8x8xf32>
    %78 = vector.shape_cast %77 : vector<1x8x8xf32> to vector<8x8xf32>
    %cst_45 = arith.constant dense<0.000000e+00> : vector<8x256xf32>
    %79 = tpu.matmul %78, %76, %cst_45 {dimension_numbers = #tpu.dot_dimension_numbers<[1], [0], [0], [1], [0, 0, 1, 1], [], []>} : vector<8x8xf32>, vector<8x256xf32>, vector<8x256xf32> -> vector<8x256xf32>
    %80 = arith.addf %69, %79 : vector<8x256xf32>
    %81 = vector.extract_strided_slice %0 {offsets = [0, 17], sizes = [8, 239], strides = [1, 1]} : vector<8x256xf32> to vector<8x239xf32>
    %82 = vector.extract_strided_slice %0 {offsets = [0, 0], sizes = [8, 17], strides = [1, 1]} : vector<8x256xf32> to vector<8x17xf32>
    %83 = tpu.concatenate %81, %82 in 1 : vector<8x239xf32>, vector<8x17xf32> -> vector<8x256xf32>
    %c8 = arith.constant 8 : index
    %c0_46 = arith.constant 0 : index
    %c0_47 = arith.constant 0 : index
    %84 = vector.load %arg2[%c8, %c0_46, %c0_47] : memref<9x1x256xf32, #tpu.memory_space<vmem>>, vector<1x1x256xf32>
    %85 = vector.shape_cast %84 : vector<1x1x256xf32> to vector<1x256xf32>
    %86 = vector.broadcast %85 : vector<1x256xf32> to vector<8x256xf32>
    %87 = arith.mulf %83, %86 : vector<8x256xf32>
    %c8_48 = arith.constant 8 : index
    %c0_49 = arith.constant 0 : index
    %c0_50 = arith.constant 0 : index
    %88 = vector.load %arg4[%c8_48, %c0_49, %c0_50] : memref<9x8x8xf32, #tpu.memory_space<vmem>>, vector<1x8x8xf32>
    %89 = vector.shape_cast %88 : vector<1x8x8xf32> to vector<8x8xf32>
    %cst_51 = arith.constant dense<0.000000e+00> : vector<8x256xf32>
    %90 = tpu.matmul %89, %87, %cst_51 {dimension_numbers = #tpu.dot_dimension_numbers<[1], [0], [0], [1], [0, 0, 1, 1], [], []>} : vector<8x8xf32>, vector<8x256xf32>, vector<8x256xf32> -> vector<8x256xf32>
    %91 = arith.addf %80, %90 : vector<8x256xf32>
    %c0_52 = arith.constant 0 : index
    %c0_53 = arith.constant 0 : index
    %92 = vector.load %arg5[%c0_52, %c0_53] : memref<8x1xf32, #tpu.memory_space<vmem>>, vector<8x1xf32>
    %93 = vector.broadcast %92 : vector<8x1xf32> to vector<8x256xf32>
    %94 = arith.addf %91, %93 : vector<8x256xf32>
    %cst_54 = arith.constant 0.000000e+00 : f32
    %95 = vector.broadcast %cst_54 : f32 to vector<8x256xf32>
    %96 = arith.maximumf %94, %95 : vector<8x256xf32>
    %97 = vector.extract_strided_slice %96 {offsets = [0, 1], sizes = [8, 255], strides = [1, 1]} : vector<8x256xf32> to vector<8x255xf32>
    %98 = vector.extract_strided_slice %96 {offsets = [0, 0], sizes = [8, 1], strides = [1, 1]} : vector<8x256xf32> to vector<8x1xf32>
    %99 = tpu.concatenate %97, %98 in 1 : vector<8x255xf32>, vector<8x1xf32> -> vector<8x256xf32>
    %100 = arith.maximumf %96, %99 : vector<8x256xf32>
    %101 = vector.extract_strided_slice %100 {offsets = [0, 16], sizes = [8, 240], strides = [1, 1]} : vector<8x256xf32> to vector<8x240xf32>
    %102 = vector.extract_strided_slice %100 {offsets = [0, 0], sizes = [8, 16], strides = [1, 1]} : vector<8x256xf32> to vector<8x16xf32>
    %103 = tpu.concatenate %101, %102 in 1 : vector<8x240xf32>, vector<8x16xf32> -> vector<8x256xf32>
    %104 = arith.maximumf %100, %103 : vector<8x256xf32>
    %105 = vector.extract_strided_slice %104 {offsets = [0, 222], sizes = [8, 34], strides = [1, 1]} : vector<8x256xf32> to vector<8x34xf32>
    %106 = vector.extract_strided_slice %104 {offsets = [0, 0], sizes = [8, 222], strides = [1, 1]} : vector<8x256xf32> to vector<8x222xf32>
    %107 = tpu.concatenate %105, %106 in 1 : vector<8x34xf32>, vector<8x222xf32> -> vector<8x256xf32>
    %c0_55 = arith.constant 0 : index
    %c0_56 = arith.constant 0 : index
    %c0_57 = arith.constant 0 : index
    %108 = vector.load %arg3[%c0_55, %c0_56, %c0_57] : memref<9x1x256xf32, #tpu.memory_space<vmem>>, vector<1x1x256xf32>
    %109 = vector.shape_cast %108 : vector<1x1x256xf32> to vector<1x256xf32>
    %110 = vector.broadcast %109 : vector<1x256xf32> to vector<8x256xf32>
    %111 = arith.mulf %107, %110 : vector<8x256xf32>
    %c0_58 = arith.constant 0 : index
    %c0_59 = arith.constant 0 : index
    %c0_60 = arith.constant 0 : index
    %112 = vector.load %arg6[%c0_58, %c0_59, %c0_60] : memref<9x8x8xf32, #tpu.memory_space<vmem>>, vector<1x8x8xf32>
    %113 = vector.shape_cast %112 : vector<1x8x8xf32> to vector<8x8xf32>
    %cst_61 = arith.constant dense<0.000000e+00> : vector<8x256xf32>
    %114 = tpu.matmul %113, %111, %cst_61 {dimension_numbers = #tpu.dot_dimension_numbers<[1], [0], [0], [1], [0, 0, 1, 1], [], []>} : vector<8x8xf32>, vector<8x256xf32>, vector<8x256xf32> -> vector<8x256xf32>
    %115 = vector.extract_strided_slice %104 {offsets = [0, 224], sizes = [8, 32], strides = [1, 1]} : vector<8x256xf32> to vector<8x32xf32>
    %116 = vector.extract_strided_slice %104 {offsets = [0, 0], sizes = [8, 224], strides = [1, 1]} : vector<8x256xf32> to vector<8x224xf32>
    %117 = tpu.concatenate %115, %116 in 1 : vector<8x32xf32>, vector<8x224xf32> -> vector<8x256xf32>
    %c1_62 = arith.constant 1 : index
    %c0_63 = arith.constant 0 : index
    %c0_64 = arith.constant 0 : index
    %118 = vector.load %arg3[%c1_62, %c0_63, %c0_64] : memref<9x1x256xf32, #tpu.memory_space<vmem>>, vector<1x1x256xf32>
    %119 = vector.shape_cast %118 : vector<1x1x256xf32> to vector<1x256xf32>
    %120 = vector.broadcast %119 : vector<1x256xf32> to vector<8x256xf32>
    %121 = arith.mulf %117, %120 : vector<8x256xf32>
    %c1_65 = arith.constant 1 : index
    %c0_66 = arith.constant 0 : index
    %c0_67 = arith.constant 0 : index
    %122 = vector.load %arg6[%c1_65, %c0_66, %c0_67] : memref<9x8x8xf32, #tpu.memory_space<vmem>>, vector<1x8x8xf32>
    %123 = vector.shape_cast %122 : vector<1x8x8xf32> to vector<8x8xf32>
    %cst_68 = arith.constant dense<0.000000e+00> : vector<8x256xf32>
    %124 = tpu.matmul %123, %121, %cst_68 {dimension_numbers = #tpu.dot_dimension_numbers<[1], [0], [0], [1], [0, 0, 1, 1], [], []>} : vector<8x8xf32>, vector<8x256xf32>, vector<8x256xf32> -> vector<8x256xf32>
    %125 = arith.addf %114, %124 : vector<8x256xf32>
    %126 = vector.extract_strided_slice %104 {offsets = [0, 226], sizes = [8, 30], strides = [1, 1]} : vector<8x256xf32> to vector<8x30xf32>
    %127 = vector.extract_strided_slice %104 {offsets = [0, 0], sizes = [8, 226], strides = [1, 1]} : vector<8x256xf32> to vector<8x226xf32>
    %128 = tpu.concatenate %126, %127 in 1 : vector<8x30xf32>, vector<8x226xf32> -> vector<8x256xf32>
    %c2_69 = arith.constant 2 : index
    %c0_70 = arith.constant 0 : index
    %c0_71 = arith.constant 0 : index
    %129 = vector.load %arg3[%c2_69, %c0_70, %c0_71] : memref<9x1x256xf32, #tpu.memory_space<vmem>>, vector<1x1x256xf32>
    %130 = vector.shape_cast %129 : vector<1x1x256xf32> to vector<1x256xf32>
    %131 = vector.broadcast %130 : vector<1x256xf32> to vector<8x256xf32>
    %132 = arith.mulf %128, %131 : vector<8x256xf32>
    %c2_72 = arith.constant 2 : index
    %c0_73 = arith.constant 0 : index
    %c0_74 = arith.constant 0 : index
    %133 = vector.load %arg6[%c2_72, %c0_73, %c0_74] : memref<9x8x8xf32, #tpu.memory_space<vmem>>, vector<1x8x8xf32>
    %134 = vector.shape_cast %133 : vector<1x8x8xf32> to vector<8x8xf32>
    %cst_75 = arith.constant dense<0.000000e+00> : vector<8x256xf32>
    %135 = tpu.matmul %134, %132, %cst_75 {dimension_numbers = #tpu.dot_dimension_numbers<[1], [0], [0], [1], [0, 0, 1, 1], [], []>} : vector<8x8xf32>, vector<8x256xf32>, vector<8x256xf32> -> vector<8x256xf32>
    %136 = arith.addf %125, %135 : vector<8x256xf32>
    %137 = vector.extract_strided_slice %104 {offsets = [0, 254], sizes = [8, 2], strides = [1, 1]} : vector<8x256xf32> to vector<8x2xf32>
    %138 = vector.extract_strided_slice %104 {offsets = [0, 0], sizes = [8, 254], strides = [1, 1]} : vector<8x256xf32> to vector<8x254xf32>
    %139 = tpu.concatenate %137, %138 in 1 : vector<8x2xf32>, vector<8x254xf32> -> vector<8x256xf32>
    %c3_76 = arith.constant 3 : index
    %c0_77 = arith.constant 0 : index
    %c0_78 = arith.constant 0 : index
    %140 = vector.load %arg3[%c3_76, %c0_77, %c0_78] : memref<9x1x256xf32, #tpu.memory_space<vmem>>, vector<1x1x256xf32>
    %141 = vector.shape_cast %140 : vector<1x1x256xf32> to vector<1x256xf32>
    %142 = vector.broadcast %141 : vector<1x256xf32> to vector<8x256xf32>
    %143 = arith.mulf %139, %142 : vector<8x256xf32>
    %c3_79 = arith.constant 3 : index
    %c0_80 = arith.constant 0 : index
    %c0_81 = arith.constant 0 : index
    %144 = vector.load %arg6[%c3_79, %c0_80, %c0_81] : memref<9x8x8xf32, #tpu.memory_space<vmem>>, vector<1x8x8xf32>
    %145 = vector.shape_cast %144 : vector<1x8x8xf32> to vector<8x8xf32>
    %cst_82 = arith.constant dense<0.000000e+00> : vector<8x256xf32>
    %146 = tpu.matmul %145, %143, %cst_82 {dimension_numbers = #tpu.dot_dimension_numbers<[1], [0], [0], [1], [0, 0, 1, 1], [], []>} : vector<8x8xf32>, vector<8x256xf32>, vector<8x256xf32> -> vector<8x256xf32>
    %147 = arith.addf %136, %146 : vector<8x256xf32>
    %c4_83 = arith.constant 4 : index
    %c0_84 = arith.constant 0 : index
    %c0_85 = arith.constant 0 : index
    %148 = vector.load %arg6[%c4_83, %c0_84, %c0_85] : memref<9x8x8xf32, #tpu.memory_space<vmem>>, vector<1x8x8xf32>
    %149 = vector.shape_cast %148 : vector<1x8x8xf32> to vector<8x8xf32>
    %cst_86 = arith.constant dense<0.000000e+00> : vector<8x256xf32>
    %150 = tpu.matmul %149, %104, %cst_86 {dimension_numbers = #tpu.dot_dimension_numbers<[1], [0], [0], [1], [0, 0, 1, 1], [], []>} : vector<8x8xf32>, vector<8x256xf32>, vector<8x256xf32> -> vector<8x256xf32>
    %151 = arith.addf %147, %150 : vector<8x256xf32>
    %152 = vector.extract_strided_slice %104 {offsets = [0, 2], sizes = [8, 254], strides = [1, 1]} : vector<8x256xf32> to vector<8x254xf32>
    %153 = vector.extract_strided_slice %104 {offsets = [0, 0], sizes = [8, 2], strides = [1, 1]} : vector<8x256xf32> to vector<8x2xf32>
    %154 = tpu.concatenate %152, %153 in 1 : vector<8x254xf32>, vector<8x2xf32> -> vector<8x256xf32>
    %c5_87 = arith.constant 5 : index
    %c0_88 = arith.constant 0 : index
    %c0_89 = arith.constant 0 : index
    %155 = vector.load %arg3[%c5_87, %c0_88, %c0_89] : memref<9x1x256xf32, #tpu.memory_space<vmem>>, vector<1x1x256xf32>
    %156 = vector.shape_cast %155 : vector<1x1x256xf32> to vector<1x256xf32>
    %157 = vector.broadcast %156 : vector<1x256xf32> to vector<8x256xf32>
    %158 = arith.mulf %154, %157 : vector<8x256xf32>
    %c5_90 = arith.constant 5 : index
    %c0_91 = arith.constant 0 : index
    %c0_92 = arith.constant 0 : index
    %159 = vector.load %arg6[%c5_90, %c0_91, %c0_92] : memref<9x8x8xf32, #tpu.memory_space<vmem>>, vector<1x8x8xf32>
    %160 = vector.shape_cast %159 : vector<1x8x8xf32> to vector<8x8xf32>
    %cst_93 = arith.constant dense<0.000000e+00> : vector<8x256xf32>
    %161 = tpu.matmul %160, %158, %cst_93 {dimension_numbers = #tpu.dot_dimension_numbers<[1], [0], [0], [1], [0, 0, 1, 1], [], []>} : vector<8x8xf32>, vector<8x256xf32>, vector<8x256xf32> -> vector<8x256xf32>
    %162 = arith.addf %151, %161 : vector<8x256xf32>
    %163 = vector.extract_strided_slice %104 {offsets = [0, 30], sizes = [8, 226], strides = [1, 1]} : vector<8x256xf32> to vector<8x226xf32>
    %164 = vector.extract_strided_slice %104 {offsets = [0, 0], sizes = [8, 30], strides = [1, 1]} : vector<8x256xf32> to vector<8x30xf32>
    %165 = tpu.concatenate %163, %164 in 1 : vector<8x226xf32>, vector<8x30xf32> -> vector<8x256xf32>
    %c6_94 = arith.constant 6 : index
    %c0_95 = arith.constant 0 : index
    %c0_96 = arith.constant 0 : index
    %166 = vector.load %arg3[%c6_94, %c0_95, %c0_96] : memref<9x1x256xf32, #tpu.memory_space<vmem>>, vector<1x1x256xf32>
    %167 = vector.shape_cast %166 : vector<1x1x256xf32> to vector<1x256xf32>
    %168 = vector.broadcast %167 : vector<1x256xf32> to vector<8x256xf32>
    %169 = arith.mulf %165, %168 : vector<8x256xf32>
    %c6_97 = arith.constant 6 : index
    %c0_98 = arith.constant 0 : index
    %c0_99 = arith.constant 0 : index
    %170 = vector.load %arg6[%c6_97, %c0_98, %c0_99] : memref<9x8x8xf32, #tpu.memory_space<vmem>>, vector<1x8x8xf32>
    %171 = vector.shape_cast %170 : vector<1x8x8xf32> to vector<8x8xf32>
    %cst_100 = arith.constant dense<0.000000e+00> : vector<8x256xf32>
    %172 = tpu.matmul %171, %169, %cst_100 {dimension_numbers = #tpu.dot_dimension_numbers<[1], [0], [0], [1], [0, 0, 1, 1], [], []>} : vector<8x8xf32>, vector<8x256xf32>, vector<8x256xf32> -> vector<8x256xf32>
    %173 = arith.addf %162, %172 : vector<8x256xf32>
    %174 = vector.extract_strided_slice %104 {offsets = [0, 32], sizes = [8, 224], strides = [1, 1]} : vector<8x256xf32> to vector<8x224xf32>
    %175 = vector.extract_strided_slice %104 {offsets = [0, 0], sizes = [8, 32], strides = [1, 1]} : vector<8x256xf32> to vector<8x32xf32>
    %176 = tpu.concatenate %174, %175 in 1 : vector<8x224xf32>, vector<8x32xf32> -> vector<8x256xf32>
    %c7_101 = arith.constant 7 : index
    %c0_102 = arith.constant 0 : index
    %c0_103 = arith.constant 0 : index
    %177 = vector.load %arg3[%c7_101, %c0_102, %c0_103] : memref<9x1x256xf32, #tpu.memory_space<vmem>>, vector<1x1x256xf32>
    %178 = vector.shape_cast %177 : vector<1x1x256xf32> to vector<1x256xf32>
    %179 = vector.broadcast %178 : vector<1x256xf32> to vector<8x256xf32>
    %180 = arith.mulf %176, %179 : vector<8x256xf32>
    %c7_104 = arith.constant 7 : index
    %c0_105 = arith.constant 0 : index
    %c0_106 = arith.constant 0 : index
    %181 = vector.load %arg6[%c7_104, %c0_105, %c0_106] : memref<9x8x8xf32, #tpu.memory_space<vmem>>, vector<1x8x8xf32>
    %182 = vector.shape_cast %181 : vector<1x8x8xf32> to vector<8x8xf32>
    %cst_107 = arith.constant dense<0.000000e+00> : vector<8x256xf32>
    %183 = tpu.matmul %182, %180, %cst_107 {dimension_numbers = #tpu.dot_dimension_numbers<[1], [0], [0], [1], [0, 0, 1, 1], [], []>} : vector<8x8xf32>, vector<8x256xf32>, vector<8x256xf32> -> vector<8x256xf32>
    %184 = arith.addf %173, %183 : vector<8x256xf32>
    %185 = vector.extract_strided_slice %104 {offsets = [0, 34], sizes = [8, 222], strides = [1, 1]} : vector<8x256xf32> to vector<8x222xf32>
    %186 = vector.extract_strided_slice %104 {offsets = [0, 0], sizes = [8, 34], strides = [1, 1]} : vector<8x256xf32> to vector<8x34xf32>
    %187 = tpu.concatenate %185, %186 in 1 : vector<8x222xf32>, vector<8x34xf32> -> vector<8x256xf32>
    %c8_108 = arith.constant 8 : index
    %c0_109 = arith.constant 0 : index
    %c0_110 = arith.constant 0 : index
    %188 = vector.load %arg3[%c8_108, %c0_109, %c0_110] : memref<9x1x256xf32, #tpu.memory_space<vmem>>, vector<1x1x256xf32>
    %189 = vector.shape_cast %188 : vector<1x1x256xf32> to vector<1x256xf32>
    %190 = vector.broadcast %189 : vector<1x256xf32> to vector<8x256xf32>
    %191 = arith.mulf %187, %190 : vector<8x256xf32>
    %c8_111 = arith.constant 8 : index
    %c0_112 = arith.constant 0 : index
    %c0_113 = arith.constant 0 : index
    %192 = vector.load %arg6[%c8_111, %c0_112, %c0_113] : memref<9x8x8xf32, #tpu.memory_space<vmem>>, vector<1x8x8xf32>
    %193 = vector.shape_cast %192 : vector<1x8x8xf32> to vector<8x8xf32>
    %cst_114 = arith.constant dense<0.000000e+00> : vector<8x256xf32>
    %194 = tpu.matmul %193, %191, %cst_114 {dimension_numbers = #tpu.dot_dimension_numbers<[1], [0], [0], [1], [0, 0, 1, 1], [], []>} : vector<8x8xf32>, vector<8x256xf32>, vector<8x256xf32> -> vector<8x256xf32>
    %195 = arith.addf %184, %194 : vector<8x256xf32>
    %c0_115 = arith.constant 0 : index
    %c0_116 = arith.constant 0 : index
    %196 = vector.load %arg7[%c0_115, %c0_116] : memref<8x1xf32, #tpu.memory_space<vmem>>, vector<8x1xf32>
    %197 = vector.broadcast %196 : vector<8x1xf32> to vector<8x256xf32>
    %198 = arith.addf %195, %197 : vector<8x256xf32>
    %cst_117 = arith.constant 0.000000e+00 : f32
    %199 = vector.broadcast %cst_117 : f32 to vector<8x256xf32>
    %200 = arith.maximumf %198, %199 : vector<8x256xf32>
    %201 = vector.extract_strided_slice %200 {offsets = [0, 2], sizes = [8, 254], strides = [1, 1]} : vector<8x256xf32> to vector<8x254xf32>
    %202 = vector.extract_strided_slice %200 {offsets = [0, 0], sizes = [8, 2], strides = [1, 1]} : vector<8x256xf32> to vector<8x2xf32>
    %203 = tpu.concatenate %201, %202 in 1 : vector<8x254xf32>, vector<8x2xf32> -> vector<8x256xf32>
    %204 = arith.maximumf %200, %203 : vector<8x256xf32>
    %205 = vector.extract_strided_slice %204 {offsets = [0, 32], sizes = [8, 224], strides = [1, 1]} : vector<8x256xf32> to vector<8x224xf32>
    %206 = vector.extract_strided_slice %204 {offsets = [0, 0], sizes = [8, 32], strides = [1, 1]} : vector<8x256xf32> to vector<8x32xf32>
    %207 = tpu.concatenate %205, %206 in 1 : vector<8x224xf32>, vector<8x32xf32> -> vector<8x256xf32>
    %208 = arith.maximumf %204, %207 : vector<8x256xf32>
    %c0_118 = arith.constant 0 : index
    %c0_119 = arith.constant 0 : index
    %209 = vector.load %arg8[%c0_118, %c0_119] : memref<256x128xf32, #tpu.memory_space<vmem>>, vector<256x128xf32>
    %cst_120 = arith.constant dense<0.000000e+00> : vector<8x128xf32>
    %210 = tpu.matmul %208, %209, %cst_120 {dimension_numbers = #tpu.dot_dimension_numbers<[1], [0], [0], [1], [0, 0, 1, 1], [], []>} : vector<8x256xf32>, vector<256x128xf32>, vector<8x128xf32> -> vector<8x128xf32>
    %211 = tpu.transpose %210, [1, 0] : vector<8x128xf32> -> vector<128x8xf32>
    %212 = vector.extract_strided_slice %211 {offsets = [0, 0], sizes = [1, 8], strides = [1, 1]} : vector<128x8xf32> to vector<1x8xf32>
    %c0_121 = arith.constant 0 : index
    %c0_122 = arith.constant 0 : index
    %c0_123 = arith.constant 0 : index
    %213 = vector.load %arg9[%c0_121, %c0_122, %c0_123] : memref<16x8x128xf32, #tpu.memory_space<vmem>>, vector<1x8x128xf32>
    %214 = vector.shape_cast %213 : vector<1x8x128xf32> to vector<8x128xf32>
    %cst_124 = arith.constant dense<0.000000e+00> : vector<1x128xf32>
    %215 = tpu.matmul %212, %214, %cst_124 {dimension_numbers = #tpu.dot_dimension_numbers<[1], [0], [0], [1], [0, 0, 1, 1], [], []>} : vector<1x8xf32>, vector<8x128xf32>, vector<1x128xf32> -> vector<1x128xf32>
    %216 = vector.extract_strided_slice %211 {offsets = [1, 0], sizes = [1, 8], strides = [1, 1]} : vector<128x8xf32> to vector<1x8xf32>
    %c1_125 = arith.constant 1 : index
    %c0_126 = arith.constant 0 : index
    %c0_127 = arith.constant 0 : index
    %217 = vector.load %arg9[%c1_125, %c0_126, %c0_127] : memref<16x8x128xf32, #tpu.memory_space<vmem>>, vector<1x8x128xf32>
    %218 = vector.shape_cast %217 : vector<1x8x128xf32> to vector<8x128xf32>
    %cst_128 = arith.constant dense<0.000000e+00> : vector<1x128xf32>
    %219 = tpu.matmul %216, %218, %cst_128 {dimension_numbers = #tpu.dot_dimension_numbers<[1], [0], [0], [1], [0, 0, 1, 1], [], []>} : vector<1x8xf32>, vector<8x128xf32>, vector<1x128xf32> -> vector<1x128xf32>
    %220 = arith.addf %215, %219 : vector<1x128xf32>
    %221 = vector.extract_strided_slice %211 {offsets = [2, 0], sizes = [1, 8], strides = [1, 1]} : vector<128x8xf32> to vector<1x8xf32>
    %c2_129 = arith.constant 2 : index
    %c0_130 = arith.constant 0 : index
    %c0_131 = arith.constant 0 : index
    %222 = vector.load %arg9[%c2_129, %c0_130, %c0_131] : memref<16x8x128xf32, #tpu.memory_space<vmem>>, vector<1x8x128xf32>
    %223 = vector.shape_cast %222 : vector<1x8x128xf32> to vector<8x128xf32>
    %cst_132 = arith.constant dense<0.000000e+00> : vector<1x128xf32>
    %224 = tpu.matmul %221, %223, %cst_132 {dimension_numbers = #tpu.dot_dimension_numbers<[1], [0], [0], [1], [0, 0, 1, 1], [], []>} : vector<1x8xf32>, vector<8x128xf32>, vector<1x128xf32> -> vector<1x128xf32>
    %225 = arith.addf %220, %224 : vector<1x128xf32>
    %226 = vector.extract_strided_slice %211 {offsets = [3, 0], sizes = [1, 8], strides = [1, 1]} : vector<128x8xf32> to vector<1x8xf32>
    %c3_133 = arith.constant 3 : index
    %c0_134 = arith.constant 0 : index
    %c0_135 = arith.constant 0 : index
    %227 = vector.load %arg9[%c3_133, %c0_134, %c0_135] : memref<16x8x128xf32, #tpu.memory_space<vmem>>, vector<1x8x128xf32>
    %228 = vector.shape_cast %227 : vector<1x8x128xf32> to vector<8x128xf32>
    %cst_136 = arith.constant dense<0.000000e+00> : vector<1x128xf32>
    %229 = tpu.matmul %226, %228, %cst_136 {dimension_numbers = #tpu.dot_dimension_numbers<[1], [0], [0], [1], [0, 0, 1, 1], [], []>} : vector<1x8xf32>, vector<8x128xf32>, vector<1x128xf32> -> vector<1x128xf32>
    %230 = arith.addf %225, %229 : vector<1x128xf32>
    %231 = vector.extract_strided_slice %211 {offsets = [4, 0], sizes = [1, 8], strides = [1, 1]} : vector<128x8xf32> to vector<1x8xf32>
    %c4_137 = arith.constant 4 : index
    %c0_138 = arith.constant 0 : index
    %c0_139 = arith.constant 0 : index
    %232 = vector.load %arg9[%c4_137, %c0_138, %c0_139] : memref<16x8x128xf32, #tpu.memory_space<vmem>>, vector<1x8x128xf32>
    %233 = vector.shape_cast %232 : vector<1x8x128xf32> to vector<8x128xf32>
    %cst_140 = arith.constant dense<0.000000e+00> : vector<1x128xf32>
    %234 = tpu.matmul %231, %233, %cst_140 {dimension_numbers = #tpu.dot_dimension_numbers<[1], [0], [0], [1], [0, 0, 1, 1], [], []>} : vector<1x8xf32>, vector<8x128xf32>, vector<1x128xf32> -> vector<1x128xf32>
    %235 = arith.addf %230, %234 : vector<1x128xf32>
    %236 = vector.extract_strided_slice %211 {offsets = [5, 0], sizes = [1, 8], strides = [1, 1]} : vector<128x8xf32> to vector<1x8xf32>
    %c5_141 = arith.constant 5 : index
    %c0_142 = arith.constant 0 : index
    %c0_143 = arith.constant 0 : index
    %237 = vector.load %arg9[%c5_141, %c0_142, %c0_143] : memref<16x8x128xf32, #tpu.memory_space<vmem>>, vector<1x8x128xf32>
    %238 = vector.shape_cast %237 : vector<1x8x128xf32> to vector<8x128xf32>
    %cst_144 = arith.constant dense<0.000000e+00> : vector<1x128xf32>
    %239 = tpu.matmul %236, %238, %cst_144 {dimension_numbers = #tpu.dot_dimension_numbers<[1], [0], [0], [1], [0, 0, 1, 1], [], []>} : vector<1x8xf32>, vector<8x128xf32>, vector<1x128xf32> -> vector<1x128xf32>
    %240 = arith.addf %235, %239 : vector<1x128xf32>
    %241 = vector.extract_strided_slice %211 {offsets = [6, 0], sizes = [1, 8], strides = [1, 1]} : vector<128x8xf32> to vector<1x8xf32>
    %c6_145 = arith.constant 6 : index
    %c0_146 = arith.constant 0 : index
    %c0_147 = arith.constant 0 : index
    %242 = vector.load %arg9[%c6_145, %c0_146, %c0_147] : memref<16x8x128xf32, #tpu.memory_space<vmem>>, vector<1x8x128xf32>
    %243 = vector.shape_cast %242 : vector<1x8x128xf32> to vector<8x128xf32>
    %cst_148 = arith.constant dense<0.000000e+00> : vector<1x128xf32>
    %244 = tpu.matmul %241, %243, %cst_148 {dimension_numbers = #tpu.dot_dimension_numbers<[1], [0], [0], [1], [0, 0, 1, 1], [], []>} : vector<1x8xf32>, vector<8x128xf32>, vector<1x128xf32> -> vector<1x128xf32>
    %245 = arith.addf %240, %244 : vector<1x128xf32>
    %246 = vector.extract_strided_slice %211 {offsets = [7, 0], sizes = [1, 8], strides = [1, 1]} : vector<128x8xf32> to vector<1x8xf32>
    %c7_149 = arith.constant 7 : index
    %c0_150 = arith.constant 0 : index
    %c0_151 = arith.constant 0 : index
    %247 = vector.load %arg9[%c7_149, %c0_150, %c0_151] : memref<16x8x128xf32, #tpu.memory_space<vmem>>, vector<1x8x128xf32>
    %248 = vector.shape_cast %247 : vector<1x8x128xf32> to vector<8x128xf32>
    %cst_152 = arith.constant dense<0.000000e+00> : vector<1x128xf32>
    %249 = tpu.matmul %246, %248, %cst_152 {dimension_numbers = #tpu.dot_dimension_numbers<[1], [0], [0], [1], [0, 0, 1, 1], [], []>} : vector<1x8xf32>, vector<8x128xf32>, vector<1x128xf32> -> vector<1x128xf32>
    %250 = arith.addf %245, %249 : vector<1x128xf32>
    %251 = vector.extract_strided_slice %211 {offsets = [8, 0], sizes = [1, 8], strides = [1, 1]} : vector<128x8xf32> to vector<1x8xf32>
    %c8_153 = arith.constant 8 : index
    %c0_154 = arith.constant 0 : index
    %c0_155 = arith.constant 0 : index
    %252 = vector.load %arg9[%c8_153, %c0_154, %c0_155] : memref<16x8x128xf32, #tpu.memory_space<vmem>>, vector<1x8x128xf32>
    %253 = vector.shape_cast %252 : vector<1x8x128xf32> to vector<8x128xf32>
    %cst_156 = arith.constant dense<0.000000e+00> : vector<1x128xf32>
    %254 = tpu.matmul %251, %253, %cst_156 {dimension_numbers = #tpu.dot_dimension_numbers<[1], [0], [0], [1], [0, 0, 1, 1], [], []>} : vector<1x8xf32>, vector<8x128xf32>, vector<1x128xf32> -> vector<1x128xf32>
    %255 = arith.addf %250, %254 : vector<1x128xf32>
    %256 = vector.extract_strided_slice %211 {offsets = [9, 0], sizes = [1, 8], strides = [1, 1]} : vector<128x8xf32> to vector<1x8xf32>
    %c9 = arith.constant 9 : index
    %c0_157 = arith.constant 0 : index
    %c0_158 = arith.constant 0 : index
    %257 = vector.load %arg9[%c9, %c0_157, %c0_158] : memref<16x8x128xf32, #tpu.memory_space<vmem>>, vector<1x8x128xf32>
    %258 = vector.shape_cast %257 : vector<1x8x128xf32> to vector<8x128xf32>
    %cst_159 = arith.constant dense<0.000000e+00> : vector<1x128xf32>
    %259 = tpu.matmul %256, %258, %cst_159 {dimension_numbers = #tpu.dot_dimension_numbers<[1], [0], [0], [1], [0, 0, 1, 1], [], []>} : vector<1x8xf32>, vector<8x128xf32>, vector<1x128xf32> -> vector<1x128xf32>
    %260 = arith.addf %255, %259 : vector<1x128xf32>
    %261 = vector.extract_strided_slice %211 {offsets = [10, 0], sizes = [1, 8], strides = [1, 1]} : vector<128x8xf32> to vector<1x8xf32>
    %c10 = arith.constant 10 : index
    %c0_160 = arith.constant 0 : index
    %c0_161 = arith.constant 0 : index
    %262 = vector.load %arg9[%c10, %c0_160, %c0_161] : memref<16x8x128xf32, #tpu.memory_space<vmem>>, vector<1x8x128xf32>
    %263 = vector.shape_cast %262 : vector<1x8x128xf32> to vector<8x128xf32>
    %cst_162 = arith.constant dense<0.000000e+00> : vector<1x128xf32>
    %264 = tpu.matmul %261, %263, %cst_162 {dimension_numbers = #tpu.dot_dimension_numbers<[1], [0], [0], [1], [0, 0, 1, 1], [], []>} : vector<1x8xf32>, vector<8x128xf32>, vector<1x128xf32> -> vector<1x128xf32>
    %265 = arith.addf %260, %264 : vector<1x128xf32>
    %266 = vector.extract_strided_slice %211 {offsets = [11, 0], sizes = [1, 8], strides = [1, 1]} : vector<128x8xf32> to vector<1x8xf32>
    %c11 = arith.constant 11 : index
    %c0_163 = arith.constant 0 : index
    %c0_164 = arith.constant 0 : index
    %267 = vector.load %arg9[%c11, %c0_163, %c0_164] : memref<16x8x128xf32, #tpu.memory_space<vmem>>, vector<1x8x128xf32>
    %268 = vector.shape_cast %267 : vector<1x8x128xf32> to vector<8x128xf32>
    %cst_165 = arith.constant dense<0.000000e+00> : vector<1x128xf32>
    %269 = tpu.matmul %266, %268, %cst_165 {dimension_numbers = #tpu.dot_dimension_numbers<[1], [0], [0], [1], [0, 0, 1, 1], [], []>} : vector<1x8xf32>, vector<8x128xf32>, vector<1x128xf32> -> vector<1x128xf32>
    %270 = arith.addf %265, %269 : vector<1x128xf32>
    %271 = vector.extract_strided_slice %211 {offsets = [12, 0], sizes = [1, 8], strides = [1, 1]} : vector<128x8xf32> to vector<1x8xf32>
    %c12 = arith.constant 12 : index
    %c0_166 = arith.constant 0 : index
    %c0_167 = arith.constant 0 : index
    %272 = vector.load %arg9[%c12, %c0_166, %c0_167] : memref<16x8x128xf32, #tpu.memory_space<vmem>>, vector<1x8x128xf32>
    %273 = vector.shape_cast %272 : vector<1x8x128xf32> to vector<8x128xf32>
    %cst_168 = arith.constant dense<0.000000e+00> : vector<1x128xf32>
    %274 = tpu.matmul %271, %273, %cst_168 {dimension_numbers = #tpu.dot_dimension_numbers<[1], [0], [0], [1], [0, 0, 1, 1], [], []>} : vector<1x8xf32>, vector<8x128xf32>, vector<1x128xf32> -> vector<1x128xf32>
    %275 = arith.addf %270, %274 : vector<1x128xf32>
    %276 = vector.extract_strided_slice %211 {offsets = [13, 0], sizes = [1, 8], strides = [1, 1]} : vector<128x8xf32> to vector<1x8xf32>
    %c13 = arith.constant 13 : index
    %c0_169 = arith.constant 0 : index
    %c0_170 = arith.constant 0 : index
    %277 = vector.load %arg9[%c13, %c0_169, %c0_170] : memref<16x8x128xf32, #tpu.memory_space<vmem>>, vector<1x8x128xf32>
    %278 = vector.shape_cast %277 : vector<1x8x128xf32> to vector<8x128xf32>
    %cst_171 = arith.constant dense<0.000000e+00> : vector<1x128xf32>
    %279 = tpu.matmul %276, %278, %cst_171 {dimension_numbers = #tpu.dot_dimension_numbers<[1], [0], [0], [1], [0, 0, 1, 1], [], []>} : vector<1x8xf32>, vector<8x128xf32>, vector<1x128xf32> -> vector<1x128xf32>
    %280 = arith.addf %275, %279 : vector<1x128xf32>
    %281 = vector.extract_strided_slice %211 {offsets = [14, 0], sizes = [1, 8], strides = [1, 1]} : vector<128x8xf32> to vector<1x8xf32>
    %c14 = arith.constant 14 : index
    %c0_172 = arith.constant 0 : index
    %c0_173 = arith.constant 0 : index
    %282 = vector.load %arg9[%c14, %c0_172, %c0_173] : memref<16x8x128xf32, #tpu.memory_space<vmem>>, vector<1x8x128xf32>
    %283 = vector.shape_cast %282 : vector<1x8x128xf32> to vector<8x128xf32>
    %cst_174 = arith.constant dense<0.000000e+00> : vector<1x128xf32>
    %284 = tpu.matmul %281, %283, %cst_174 {dimension_numbers = #tpu.dot_dimension_numbers<[1], [0], [0], [1], [0, 0, 1, 1], [], []>} : vector<1x8xf32>, vector<8x128xf32>, vector<1x128xf32> -> vector<1x128xf32>
    %285 = arith.addf %280, %284 : vector<1x128xf32>
    %286 = vector.extract_strided_slice %211 {offsets = [15, 0], sizes = [1, 8], strides = [1, 1]} : vector<128x8xf32> to vector<1x8xf32>
    %c15 = arith.constant 15 : index
    %c0_175 = arith.constant 0 : index
    %c0_176 = arith.constant 0 : index
    %287 = vector.load %arg9[%c15, %c0_175, %c0_176] : memref<16x8x128xf32, #tpu.memory_space<vmem>>, vector<1x8x128xf32>
    %288 = vector.shape_cast %287 : vector<1x8x128xf32> to vector<8x128xf32>
    %cst_177 = arith.constant dense<0.000000e+00> : vector<1x128xf32>
    %289 = tpu.matmul %286, %288, %cst_177 {dimension_numbers = #tpu.dot_dimension_numbers<[1], [0], [0], [1], [0, 0, 1, 1], [], []>} : vector<1x8xf32>, vector<8x128xf32>, vector<1x128xf32> -> vector<1x128xf32>
    %290 = arith.addf %285, %289 : vector<1x128xf32>
    %c0_178 = arith.constant 0 : index
    %c0_179 = arith.constant 0 : index
    %291 = vector.load %arg10[%c0_178, %c0_179] : memref<1x128xf32, #tpu.memory_space<vmem>>, vector<1x128xf32>
    %292 = arith.addf %290, %291 : vector<1x128xf32>
    %c0_180 = arith.constant 0 : index
    %c0_181 = arith.constant 0 : index
    %c0_182 = arith.constant 0 : index
    %293 = vector.load %arg11[%c0_180, %c0_181, %c0_182] : memref<1x1x128xf32, #tpu.memory_space<vmem>>, vector<1x1x128xf32>
    %294 = vector.shape_cast %293 : vector<1x1x128xf32> to vector<1x128xf32>
    %295 = vector.shape_cast %292 : vector<1x128xf32> to vector<1x1x128xf32>
    tpu.vector_store %arg11[%c0_180, %c0_181, %c0_182], %295 {strides = array<i32>} : memref<1x1x128xf32, #tpu.memory_space<vmem>>, vector<1x1x128xf32>,
    return
  }
  func.func @transform_0(%arg0: i32) -> (i32, i32) {
    %c0_i32 = arith.constant 0 : i32
    %c0_i32_0 = arith.constant 0 : i32
    return %c0_i32, %arg0 : i32, i32
  }
  func.func @transform_1(%arg0: i32) -> (i32, i32, i32) {
    %c0_i32 = arith.constant 0 : i32
    %c0_i32_0 = arith.constant 0 : i32
    %c0_i32_1 = arith.constant 0 : i32
    %c0_i32_2 = arith.constant 0 : i32
    return %c0_i32, %c0_i32_0, %c0_i32_1 : i32, i32, i32
  }
  func.func @transform_2(%arg0: i32) -> (i32, i32, i32) {
    %c0_i32 = arith.constant 0 : i32
    %c0_i32_0 = arith.constant 0 : i32
    %c0_i32_1 = arith.constant 0 : i32
    %c0_i32_2 = arith.constant 0 : i32
    return %c0_i32, %c0_i32_0, %c0_i32_1 : i32, i32, i32
  }
  func.func @transform_3(%arg0: i32) -> (i32, i32, i32) {
    %c0_i32 = arith.constant 0 : i32
    %c0_i32_0 = arith.constant 0 : i32
    %c0_i32_1 = arith.constant 0 : i32
    %c0_i32_2 = arith.constant 0 : i32
    return %c0_i32, %c0_i32_0, %c0_i32_1 : i32, i32, i32
  }
  func.func @transform_4(%arg0: i32) -> (i32, i32) {
    %c0_i32 = arith.constant 0 : i32
    %c0_i32_0 = arith.constant 0 : i32
    %c0_i32_1 = arith.constant 0 : i32
    return %c0_i32, %c0_i32_0 : i32, i32
  }
  func.func @transform_5(%arg0: i32) -> (i32, i32, i32) {
    %c0_i32 = arith.constant 0 : i32
    %c0_i32_0 = arith.constant 0 : i32
    %c0_i32_1 = arith.constant 0 : i32
    %c0_i32_2 = arith.constant 0 : i32
    return %c0_i32, %c0_i32_0, %c0_i32_1 : i32, i32, i32
  }
  func.func @transform_6(%arg0: i32) -> (i32, i32) {
    %c0_i32 = arith.constant 0 : i32
    %c0_i32_0 = arith.constant 0 : i32
    %c0_i32_1 = arith.constant 0 : i32
    return %c0_i32, %c0_i32_0 : i32, i32
  }
  func.func @transform_7(%arg0: i32) -> (i32, i32) {
    %c0_i32 = arith.constant 0 : i32
    %c0_i32_0 = arith.constant 0 : i32
    %c0_i32_1 = arith.constant 0 : i32
    return %c0_i32, %c0_i32_0 : i32, i32
  }
  func.func @transform_8(%arg0: i32) -> (i32, i32, i32) {
    %c0_i32 = arith.constant 0 : i32
    %c0_i32_0 = arith.constant 0 : i32
    %c0_i32_1 = arith.constant 0 : i32
    %c0_i32_2 = arith.constant 0 : i32
    return %c0_i32, %c0_i32_0, %c0_i32_1 : i32, i32, i32
  }
  func.func @transform_9(%arg0: i32) -> (i32, i32) {
    %c0_i32 = arith.constant 0 : i32
    %c0_i32_0 = arith.constant 0 : i32
    %c0_i32_1 = arith.constant 0 : i32
    return %c0_i32, %c0_i32_0 : i32, i32
  }
  func.func @transform_10(%arg0: i32) -> (i32, i32, i32) {
    %c0_i32 = arith.constant 0 : i32
    %c0_i32_0 = arith.constant 0 : i32
    %c0_i32_1 = arith.constant 0 : i32
    return %arg0, %c0_i32, %c0_i32_0 : i32, i32, i32
  }
}

</mosaic_0001>

<bundles_post_ra>
// kernel: cnn_forward.1
= control target key start
LH: loop header
LB: loop body
LE: loop exit
PB: predicated region body
PF: predicated region fallthrough
CT: control target
= control target key end

     0   :  { %s2940_s0 = inlined_call_operand.vmem [shape: f32[8,512], index: 0, kind: input, shape index: {}]   ;;  %s2941_s1 = inlined_call_operand.vmem [shape: f32[9,1,256], index: 1, kind: input, shape index: {}]   ;;  %s2942_s2 = inlined_call_operand.vmem [shape: f32[9,1,256], index: 2, kind: input, shape index: {}]   ;;  %s2943_s3 = inlined_call_operand.vmem [shape: f32[9,8,8], index: 3, kind: input, shape index: {}]   ;;  %s2944_s4 = inlined_call_operand.vmem [shape: f32[8,1], index: 4, kind: input, shape index: {}]   ;;  %s2945_s5 = inlined_call_operand.vmem [shape: f32[9,8,8], index: 5, kind: input, shape index: {}]   ;;  %s2946_s6 = inlined_call_operand.vmem [shape: f32[8,1], index: 6, kind: input, shape index: {}]   ;;  %s2947_s7 = inlined_call_operand.hbm [shape: f32[256,128], index: 7, kind: input, shape index: {}]   ;;  %s2948_s8 = inlined_call_operand.vmem [shape: f32[16,8,128], index: 8, kind: input, shape index: {}]   ;;  %s2949_s9 = inlined_call_operand.vmem [shape: f32[1,128], index: 9, kind: input, shape index: {}]   ;;  %s2950_s10 = inlined_call_operand.hbm [shape: f32[2,1,128], index: 10, kind: output, shape index: {}]  }
   0x1   :  { %2951 = sst [smem:[#allocation8_spill]] %s2940_s0 }
   0x2   :  { %15 = vsyncpa [#allocation3], 0 }
   0x3   :  { %16 = vsyncpa [#allocation4], 0 }
   0x4   :  { %18 = vsyncpa [#allocation4 + $0x1], 0  ;;  %s2555_s13 = smov 0   ;;  %s2557_s14 = smov 0  }
   0x5   :  { %s2559_s15 = smov 0   ;;  %s2561_s16 = smov 0  }
   0x6 LB: > { %s2576_s17 = sadd.s32 4294967295, %s2478_s16   ;;  %s2193_s18 = sadd.s32 4294967294, %s2478_s16   ;;  %s2478_s16 = sphi %s2561_s16, %s2958_s16   ;;  %s2474_s15 = sphi %s2559_s15, %s2957_s15   ;;  %s2470_s14 = sphi %s2557_s14, %s2956_s14   ;;  %s2466_s13 = sphi %s2555_s13, %s2955_s13  }
   0x7   : > { %s2580_s19 = sadd.s32 1, %s2478_s16   ;;  %s246_s20 = sadd.s32 1, %s2474_s15 }
   0x8   : > { %s243_s21 = ssub.s32 %s2478_s16, %s2580_s19  ;;  %p256_p0 = scmp.ne.s32.totalorder %s2474_s15, %s2470_s14 }
   0x9   : > { %p244_p1 = scmp.eq.s32.totalorder %s243_s21, 0  ;;  %p257_p2 = scmp.eq.s32.totalorder %s2576_s17, 1 }
   0xa   : > { %p262_p3 = scmp.ne.s32.totalorder %s2470_s14, %s2466_s13  ;;  %p263_p4 = scmp.eq.s32.totalorder %s2193_s18, 1 }
   0xb   : > { %s2591_s22 = scalar_select %p244_p1, %s2474_s15, %s246_s20  }
   0xc   : > { %p2593_p5 = por %p257_p2, %p256_p0  ;;  %p2597_p6 = por %p263_p4, %p262_p3 }
   0xd   : > { %p2194_p7 = scmp.ge.s32.totalorder %s2478_s16, 1  ;;  %p270_p8 = scmp.lt.s32.totalorder %s2478_s16, 3 }
   0xe   : > { %p2314_p9 = scmp.eq.s32.totalorder %s2576_s17, 0  ;;  %s299_s27 = sshll.u32 %s2947_s7, 4  ;;  %s300_s27 = int_to_ptr.hbm [resolvable:$true] %s299_s27 }
   0xf   : > { %p271_p10 = pnand %p2194_p7, %p270_p8  ;;  %s2480_s28 = smov [#allocation2]  }
  0x10   : > { %s301_s29 = sshll.u32 %s2480_s28, 4  ;;  %s2481_s30 = smov 128   ;;  %s302_s29 = int_to_ptr.vmem [resolvable:$true] %s301_s29 }
  0x11   : > { %p2306_p11 = pneg %p271_p10  ;;  %s2482_s11 = smov 8  }
  0x12   : > { %332 = sbr.rel (%p271_p10) target bundleno = 1550 (0x60e), region = 60 }
  0x13   : > { %p2307_p12 = pnand %p2314_p9, %p2306_p11 }
  0x15   : > { %2309 = dma.hbm_to_vmem [thread:$0]  (!%p2307_p12), %s300_s27, 4096, %s302_s29, [#allocation3], %s2481_s30, %s2481_s30, %s2482_s11  }
  0x17   : > { %2457 = dma.done.wait (%p2314_p9), [#allocation3], 4096  }
  0x18   : > { %2459 = vsyncadd (%p2314_p9), [#allocation3], 4294963200  ;;  %s2199_s12 = sshll.u32 %s2576_s17, 1  ;;  %s2954_s0 = sld [smem:[#allocation8_spill]]  ;;  %v2201_v6 = vld [vmem:[%s2941_s1 + $0x2] sm:$0x3] }
  0x19   : > { %p371_p13 = scmp.lt.s32.totalorder %s2199_s12, 3  ;;  %s2483_s26 = smov 16   ;;  %v390_v7 = vld [vmem:[%s2941_s1] sm:$0x3]  ;;  %vm512_vm0 = vcmask 121856   ;;  %vm404_vm1 = vcmask 130048  }
  0x1a   : > { %s2484_s27 = smov 17   ;;  %s2485_s28 = smov 15   ;;  %v412_v8 = vperm.slane %v2201_v6, 0  ;;  %v2207_v9 = vld [vmem:[%s2941_s1 + $0x4] sm:$0x3]  ;;  %v413_v10 = vperm.slane %v2201_v6, 1 }
  0x1b   : > { %s2960_s12 = smov (!%p371_p13, %s2199_s12), 3  ;;  %s2486_s29 = smov 1   ;;  %vm385_vm2 = vcmask 138240   ;;  %v392_v11 = vperm.slane %v390_v7, 0  ;;  %v393_v12 = vperm.slane %v390_v7, 1  ;;  %v520_v17 = vperm.slane %v2207_v9, 0 }
  0x1c   : > { %s2200_s18 = sshll.u32 %s2960_s12, 3  ;;  %s2487_s30 = smov 127   ;;  %v521_v18 = vperm.slane %v2207_v9, 1  ;;  %v2202_v27 = vld [vmem:[%s2943_s3 + $0x8] sm:$0xff]  ;;  %vm420_vm3 = vcmask 64512   ;;  %v398_v29 = vld [vmem:[%s2943_s3] sm:$0xff] }
  0x1d   : > { %s2488_s11 = smov 113   ;;  %s2489_s12 = smov 112   ;;  %v2211_v28 = vld [vmem:[%s2941_s1 + $0x6] sm:$0x3]  ;;  %vm578_vm4 = vcmask 7168   ;;  %v2491_v43 = vmov 0  }
  0x1e   : > { %s374_s25 = scalar_lea.vmem %s2954_s0, %s2200_s18  ;;  %s2490_s18 = smov 111   ;;  %v586_v33 = vperm.slane %v2211_v28, 0  ;;  %v587_v34 = vperm.slane %v2211_v28, 1  ;;  %v950_v37 = vld [vmem:[%s2944_s4] sm:$0xff]  ;;  %v2222_v42 = vld [vmem:[%s2941_s1 + $0xc] sm:$0x3]  ;;  %2370 = vset.pattern.permute.xlu1 %v2491_v43  ;;  %2381 = vset.pattern.permute.xlu0 %v2491_v43 }
  0x1f   : > { %v2617_v0 = vld [vmem:[%s374_s25 + $0x8] sm:$0xff]  ;;  %v2622_v1 = vld [vmem:[%s374_s25] sm:$0xff]  ;;  %v2208_v44 = vld [vmem:[%s2943_s3 + $0x10] sm:$0xff]  ;;  %vm756_vm5 = vcmask 924672   ;;  %v765_v47 = vperm.slane %v2222_v42, 0  ;;  %v766_v49 = vperm.slane %v2222_v42, 1 }
  0x20   : > { %399 = vrot.lane.b32.xlu1 %v2617_v0, %s2483_s26  ;;  %379 = vrot.lane.b32.xlu0 %v2617_v0, %s2484_s27  ;;  %v2218_v45 = vld [vmem:[%s2941_s1 + $0xa] sm:$0x3]  ;;  %v2212_v46 = vld [vmem:[%s2943_s3 + $0x18] sm:$0xff]  ;;  %vm690_vm6 = vcmask 1039360   ;;  %vm822_vm7 = vcmask 916480   ;;  %vm888_vm8 = vcmask 908288  }
  0x21   : > { %507 = vrot.lane.b32.xlu2 %v2617_v0, %s2485_s28  ;;  %v699_v50 = vperm.slane %v2218_v45, 0  ;;  %v700_v51 = vperm.slane %v2218_v45, 1  ;;  %v2215_v62 = vld [vmem:[%s2943_s3 + $0x20] sm:$0xff]  ;;  %v2226_v63 = vld [vmem:[%s2941_s1 + $0xe] sm:$0x3]  ;;  %v2223_v9 = vld [vmem:[%s2943_s3 + $0x30] sm:$0xff] }
  0x22   : > { %s2493_s20 = smov 32   ;;  %s2494_s21 = smov 34   ;;  %vm1012_vm9 = vcmask 261120   ;;  %vm1119_vm10 = vcmask 244736   ;;  %vm993_vm11 = vcmask 277504   ;;  %vm1185_vm12 = vcmask 15360  }
  0x23   : > { %s2496_s25 = smov 2   ;;  %vm1363_vm13 = vcmask 801792   ;;  %vm1297_vm14 = vcmask 1031168   ;;  %vm1495_vm15 = vcmask 769024  }
  0x28   : > { %402 = vrot.lane.b32.xlu1 %v2622_v1, %s2483_s26  ;;  %383 = vrot.lane.b32.xlu0 %v2622_v1, %s2484_s27  ;;  %s2497_s26 = smov 126   ;;  %s2498_s27 = smov 96  }
  0x29   : > { %510 = vrot.lane.b32.xlu2 %v2622_v1, %s2485_s28  ;;  %s2499_s28 = smov 94  }
  0x30   : > { %576 = vrot.lane.b32.xlu1 %v2622_v1, %s2486_s29  ;;  %573 = vrot.lane.b32.xlu0 %v2617_v0, %s2486_s29  ;;  %s2122_s29 = scalar_lea.hbm %s2950_s10, %s2576_s17 }
  0x31   : > { %686 = vrot.lane.b32.xlu2 %v2622_v1, %s2487_s30 }
  0x38   : > { %752 = vrot.lane.b32.xlu1 %v2622_v1, %s2488_s11  ;;  %688 = vrot.lane.b32.xlu0 %v2617_v0, %s2487_s30 }
  0x39   : > { %754 = vrot.lane.b32.xlu2 %v2617_v0, %s2488_s11  ;;  %s2432_s11 = scalar_lea.hbm %s2950_s10, 2 }
  0x40   : > { %820 = vrot.lane.b32.xlu1 %v2617_v0, %s2489_s12  ;;  %818 = vrot.lane.b32.xlu0 %v2622_v1, %s2489_s12 }
  0x41   : > { %884 = vrot.lane.b32.xlu2 %v2622_v1, %s2490_s18 }
  0x48   : > { %886 = vrot.lane.b32.xlu0 %v2617_v0, %s2490_s18  ;;  %953 = vperm.xlu1 %2370, %v950_v37  }
  0x7b   : > { %v508_v2 = vpop.permute.xlu2 %507 }
  0x83   : > { %v511_v5 = vpop.permute.xlu2 %510 }
  0x84   : > { %v513_v13 = vsel %vm512_vm0, %v511_v5, %v508_v2  ;;  %v516_v14 = vsel %vm512_vm0, %v508_v2, %v511_v5  ;;  %v832_v2 = vperm.slane %v2226_v63, 1  ;;  %vm1429_vm0 = vcmask 785408  }
  0x85   : > { %v524_v30 = vmul.f32 %v520_v17, %v516_v14  ;;  %v525_v31 = vmul.f32 %v521_v18, %v513_v13 }
  0x8b   : > { %v687_v32 = vpop.permute.xlu2 %686 }
  0x92   : > { %v400_v3 = vpop.permute.xlu1 %399  ;;  %v380_v4 = vpop.permute.xlu0 %379 }
  0x93   : > { %v755_v48 = vpop.permute.xlu2 %754 }
  0x9a   : > { %v403_v15 = vpop.permute.xlu1 %402  ;;  %v384_v16 = vpop.permute.xlu0 %383 }
  0x9b   : > { %v408_v19 = vsel %vm404_vm1, %v400_v3, %v403_v15  ;;  %v405_v20 = vsel %vm404_vm1, %v403_v15, %v400_v3  ;;  %v389_v21 = vsel %vm385_vm2, %v380_v4, %v384_v16  ;;  %v386_v22 = vsel %vm385_vm2, %v384_v16, %v380_v4 }
  0x9c   : > { %v416_v23 = vmul.f32 %v412_v8, %v408_v19  ;;  %v417_v24 = vmul.f32 %v413_v10, %v405_v20  ;;  %v396_v25 = vmul.f32 %v392_v11, %v389_v21  ;;  %v397_v26 = vmul.f32 %v393_v12, %v386_v22  ;;  %v2230_v10 = vld [vmem:[%s2941_s1 + $0x10] sm:$0x3]  ;;  %v2227_v11 = vld [vmem:[%s2943_s3 + $0x38] sm:$0xff]  ;;  %v885_v12 = vpop.permute.xlu2 %884  ;;  %v2231_v20 = vld [vmem:[%s2943_s3 + $0x40] sm:$0xff] }
  0x9d   : > { %v897_v13 = vperm.slane %v2230_v10, 0  ;;  %v898_v14 = vperm.slane %v2230_v10, 1  ;;  %v2234_v10 = vld [vmem:[%s2942_s2 + $0x2] sm:$0x3] }
  0x9e   : > { %439 = vmatpush.msra.mxu0 %v416_v23  ;;  %459 = vmatpush.msra.mxu1 %v417_v24 }
  0x9f   : > { %482 = vmatpush.msra.mxu2 %v396_v25  ;;  %502 = vmatpush.msra.mxu3 %v397_v26 }
  0xa0   : > { %2203 = vmatmul.msk.f32.vlgmr.msra.gmra.mxu0 %vm420_vm3, %v2202_v27  ;;  %2204 = vmatmul.msk.f32.vlgmr.msra.gmra.mxu1 %vm420_vm3, %v2202_v27 }
  0xa1   : > { %2205 = vmatmul.msk.f32.vlgmr.msra.gmra.mxu2 %vm420_vm3, %v398_v29  ;;  %2206 = vmatmul.msk.f32.vlgmr.msra.gmra.mxu3 %vm420_vm3, %v398_v29 }
  0xa2   : > { %546 = vmatpush.msrb.mxu0 %v524_v30  ;;  %566 = vmatpush.msrb.mxu1 %v525_v31  ;;  %v577_v35 = vpop.permute.xlu1 %576  ;;  %v574_v36 = vpop.permute.xlu0 %573 }
  0xa3   : > { %v579_v38 = vsel %vm578_vm4, %v577_v35, %v574_v36  ;;  %v582_v39 = vsel %vm578_vm4, %v574_v36, %v577_v35 }
  0xa4   : > { %659 = vmatpush.msra.mxu0 %v2622_v1  ;;  %679 = vmatpush.msra.mxu1 %v2617_v0  ;;  %v590_v40 = vmul.f32 %v586_v33, %v582_v39  ;;  %v591_v41 = vmul.f32 %v587_v34, %v579_v38  ;;  %v2219_v0 = vld [vmem:[%s2943_s3 + $0x28] sm:$0xff]  ;;  %v831_v1 = vperm.slane %v2226_v63, 0 }
  0xa6   : > { %612 = vmatpush.msrb.mxu2 %v590_v40  ;;  %632 = vmatpush.msrb.mxu3 %v591_v41 }
  0xa8   : > { %2209 = vmatmul.msk.f32.vlgmr.msrb.gmra.mxu0 %vm420_vm3, %v2208_v44  ;;  %2210 = vmatmul.msk.f32.vlgmr.msrb.gmra.mxu1 %vm420_vm3, %v2208_v44 }
  0xa9   : > { %2213 = vmatmul.msk.f32.vlgmr.msrb.gmra.mxu2 %vm420_vm3, %v2212_v46  ;;  %2214 = vmatmul.msk.f32.vlgmr.msrb.gmra.mxu3 %vm420_vm3, %v2212_v46 }
  0xaa   : > { %v753_v52 = vpop.permute.xlu1 %752  ;;  %v689_v53 = vpop.permute.xlu0 %688 }
  0xab   : > { %v757_v54 = vsel %vm756_vm5, %v753_v52, %v755_v48  ;;  %v761_v55 = vsel %vm756_vm5, %v755_v48, %v753_v52  ;;  %v691_v56 = vsel %vm690_vm6, %v687_v32, %v689_v53  ;;  %v695_v57 = vsel %vm690_vm6, %v689_v53, %v687_v32 }
  0xac   : > { %v769_v58 = vmul.f32 %v765_v47, %v757_v54  ;;  %v770_v59 = vmul.f32 %v766_v49, %v761_v55  ;;  %v703_v60 = vmul.f32 %v699_v50, %v691_v56  ;;  %v704_v61 = vmul.f32 %v700_v51, %v695_v57 }
  0xae   : > { %725 = vmatpush.msra.mxu2 %v703_v60  ;;  %745 = vmatpush.msra.mxu3 %v704_v61 }
  0xaf   : > { %791 = vmatpush.msrb.mxu0 %v769_v58  ;;  %811 = vmatpush.msrb.mxu1 %v770_v59 }
  0xb0   : > { %2216 = vmatmul.msk.f32.vlgmr.msra.gmra.mxu0 %vm420_vm3, %v2215_v62  ;;  %2217 = vmatmul.msk.f32.vlgmr.msra.gmra.mxu1 %vm420_vm3, %v2215_v62 }
  0xb1   : > { %2220 = vmatmul.msk.f32.vlgmr.msra.gmra.mxu2 %vm420_vm3, %v2219_v0  ;;  %2221 = vmatmul.msk.f32.vlgmr.msra.gmra.mxu3 %vm420_vm3, %v2219_v0 }
  0xb2   : > { %v821_v3 = vpop.permute.xlu1 %820  ;;  %v819_v4 = vpop.permute.xlu0 %818 }
  0xb3   : > { %v823_v5 = vsel %vm822_vm7, %v819_v4, %v821_v3  ;;  %v827_v6 = vsel %vm822_vm7, %v821_v3, %v819_v4 }
  0xb4   : > { %v835_v7 = vmul.f32 %v831_v1, %v823_v5  ;;  %v836_v8 = vmul.f32 %v832_v2, %v827_v6 }
  0xb6   : > { %857 = vmatpush.msrb.mxu2 %v835_v7  ;;  %877 = vmatpush.msrb.mxu3 %v836_v8  ;;  %v1557_v8 = vld [vmem:[%s2946_s6] sm:$0xff] }
  0xb8   : > { %2224 = vmatmul.msk.f32.vlgmr.msrb.gmra.mxu0 %vm420_vm3, %v2223_v9  ;;  %2225 = vmatmul.msk.f32.vlgmr.msrb.gmra.mxu1 %vm420_vm3, %v2223_v9 }
  0xb9   : > { %2228 = vmatmul.msk.f32.vlgmr.msrb.gmra.mxu2 %vm420_vm3, %v2227_v11  ;;  %2229 = vmatmul.msk.f32.vlgmr.msrb.gmra.mxu3 %vm420_vm3, %v2227_v11  ;;  %v1020_v11 = vperm.slane %v2234_v10, 0 }
  0xba   : > { %v887_v15 = vpop.permute.xlu0 %886  ;;  %v954_v53 = vpop.permute.xlu1 %953 }
  0xbb   : > { %v889_v16 = vsel %vm888_vm8, %v885_v12, %v887_v15  ;;  %v893_v17 = vsel %vm888_vm8, %v887_v15, %v885_v12  ;;  %v1021_v12 = vperm.slane %v2234_v10, 1 }
  0xbc   : > { %v901_v18 = vmul.f32 %v897_v13, %v889_v16  ;;  %v902_v19 = vmul.f32 %v898_v14, %v893_v17 }
  0xbe   : > { %923 = vmatpush.msra.mxu0 %v901_v18  ;;  %943 = vmatpush.msra.mxu1 %v902_v19  ;;  %v2235_v19 = vld [vmem:[%s2945_s5 + $0x8] sm:$0xff] }
  0xc0   : > { %2232 = vmatmul.msk.f32.vlgmr.msra.gmra.mxu0 %vm420_vm3, %v2231_v20  ;;  %2233 = vmatmul.msk.f32.vlgmr.msra.gmra.mxu1 %vm420_vm3, %v2231_v20  ;;  %v2240_v20 = vld [vmem:[%s2942_s2 + $0x4] sm:$0x3] }
 0x11d   : > { %v441_v21 = vpop.f32.mrf.mxu0  ;;  %v461_v22 = vpop.f32.mrf.mxu1 }
 0x124   : > { %v484_v23 = vpop.f32.mrf.mxu2  ;;  %v504_v24 = vpop.f32.mrf.mxu3 }
 0x125   : > { %v485_v25 = vadd.f32 %v484_v23, %v441_v21  ;;  %v548_v26 = vpop.f32.mrf.mxu0  ;;  %v568_v27 = vpop.f32.mrf.mxu1  ;;  %v505_v29 = vadd.f32 %v504_v24, %v461_v22  ;;  %v998_v21 = vld [vmem:[%s2942_s2] sm:$0x3]  ;;  %v1127_v23 = vperm.slane %v2240_v20, 0  ;;  %v1128_v24 = vperm.slane %v2240_v20, 1 }
 0x127   : > { %v571_v28 = vadd.f32 %v548_v26, %v485_v25  ;;  %v572_v35 = vadd.f32 %v568_v27, %v505_v29  ;;  %v1000_v25 = vperm.slane %v998_v21, 0  ;;  %v1001_v26 = vperm.slane %v998_v21, 1 }
 0x12c   : > { %v614_v30 = vpop.f32.mrf.mxu2  ;;  %v634_v31 = vpop.f32.mrf.mxu3 }
 0x12d   : > { %v637_v32 = vadd.f32 %v614_v30, %v571_v28  ;;  %v661_v33 = vpop.f32.mrf.mxu0  ;;  %v681_v34 = vpop.f32.mrf.mxu1  ;;  %v638_v36 = vadd.f32 %v634_v31, %v572_v35 }
 0x12f   : > { %v684_v37 = vadd.f32 %v661_v33, %v637_v32  ;;  %v685_v40 = vadd.f32 %v681_v34, %v638_v36 }
 0x134   : > { %v727_v38 = vpop.f32.mrf.mxu2  ;;  %v747_v39 = vpop.f32.mrf.mxu3 }
 0x135   : > { %v750_v41 = vadd.f32 %v727_v38, %v684_v37  ;;  %v793_v42 = vpop.f32.mrf.mxu0  ;;  %v813_v43 = vpop.f32.mrf.mxu1  ;;  %v751_v44 = vadd.f32 %v747_v39, %v685_v40  ;;  %v2241_v37 = vld [vmem:[%s2945_s5 + $0x10] sm:$0xff]  ;;  %v2244_v38 = vld [vmem:[%s2942_s2 + $0x6] sm:$0x3] }
 0x136   : > { %v1006_v39 = vld [vmem:[%s2945_s5] sm:$0xff] }
 0x137   : > { %v816_v45 = vadd.f32 %v793_v42, %v750_v41  ;;  %v817_v46 = vadd.f32 %v813_v43, %v751_v44  ;;  %v1193_v41 = vperm.slane %v2244_v38, 0  ;;  %v1194_v42 = vperm.slane %v2244_v38, 1 }
 0x13c   : > { %v859_v47 = vpop.f32.mrf.mxu2  ;;  %v879_v48 = vpop.f32.mrf.mxu3 }
 0x13d   : > { %v882_v49 = vadd.f32 %v859_v47, %v816_v45  ;;  %v883_v50 = vadd.f32 %v879_v48, %v817_v46  ;;  %v925_v51 = vpop.f32.mrf.mxu0  ;;  %v945_v52 = vpop.f32.mrf.mxu1 }
 0x13f   : > { %v948_v54 = vadd.f32 %v925_v51, %v882_v49  ;;  %v949_v55 = vadd.f32 %v945_v52, %v883_v50  ;;  %v2248_v49 = vld [vmem:[%s2945_s5 + $0x20] sm:$0xff]  ;;  %v2255_v50 = vld [vmem:[%s2942_s2 + $0xc] sm:$0x3]  ;;  %v2251_v51 = vld [vmem:[%s2942_s2 + $0xa] sm:$0x3] }
 0x140   : > { %v2245_v52 = vld [vmem:[%s2945_s5 + $0x18] sm:$0xff] }
 0x141   : > { %v956_v56 = vadd.f32 %v954_v53, %v948_v54  ;;  %v957_v57 = vadd.f32 %v954_v53, %v949_v55  ;;  %v1372_v53 = vperm.slane %v2255_v50, 0  ;;  %v1373_v54 = vperm.slane %v2255_v50, 1 }
 0x142   : > { %v1306_v55 = vperm.slane %v2251_v51, 0 }
 0x143   : > { %v958_v58 = vmax.f32 %v956_v56, 0.0  ;;  %v959_v59 = vmax.f32 %v957_v57, 0.0  ;;  %v1307_v56 = vperm.slane %v2251_v51, 1 }
 0x145   : > { %964 = vrot.lane.b32.xlu0 %v959_v59, %s2487_s30  ;;  %962 = vrot.lane.b32.xlu2 %v958_v58, %s2487_s30  ;;  %s2492_s30 = smov 30  }
 0x19f   : > { %v963_v60 = vpop.permute.xlu2 %962 }
 0x1b7   : > { %v965_v61 = vpop.permute.xlu0 %964 }
 0x1b8   : > { %v966_v62 = vsel %vm690_vm6, %v963_v60, %v965_v61  ;;  %v970_v63 = vsel %vm690_vm6, %v965_v61, %v963_v60 }
 0x1b9   : > { %v971_v0 = vmax.f32 %v958_v58, %v966_v62  ;;  %v972_v1 = vmax.f32 %v959_v59, %v970_v63 }
 0x1bb   : > { %977 = vrot.lane.b32.xlu2 %v972_v1, %s2489_s12  ;;  %975 = vrot.lane.b32.xlu1 %v971_v0, %s2489_s12  ;;  %s2495_s12 = smov 98  }
 0x215   : > { %v978_v2 = vpop.permute.xlu2 %977 }
 0x22d   : > { %v976_v3 = vpop.permute.xlu1 %975 }
 0x22e   : > { %v979_v4 = vsel %vm822_vm7, %v976_v3, %v978_v2  ;;  %v983_v5 = vsel %vm822_vm7, %v978_v2, %v976_v3 }
 0x22f   : > { %v2727_v6 = vmax.f32 %v971_v0, %v979_v4  ;;  %v2729_v7 = vmax.f32 %v972_v1, %v983_v5  ;;  %v2256_v4 = vld [vmem:[%s2945_s5 + $0x30] sm:$0xff] }
 0x230   : > { %v2263_v5 = vld [vmem:[%s2942_s2 + $0x10] sm:$0x3] }
 0x231   : > { %1114 = vrot.lane.b32.xlu2 %v2729_v7, %s2492_s30  ;;  %1007 = vrot.lane.b32.xlu0 %v2729_v7, %s2493_s20 }
 0x232   : > { %1010 = vrot.lane.b32.xlu1 %v2727_v6, %s2493_s20 }
 0x239   : > { %991 = vrot.lane.b32.xlu2 %v2727_v6, %s2494_s21  ;;  %1117 = vrot.lane.b32.xlu0 %v2727_v6, %s2492_s30 }
 0x23a   : > { %987 = vrot.lane.b32.xlu1 %v2729_v7, %s2494_s21  ;;  %s2126_s21 = sshll.u32 %s2122_s29, 4  ;;  %s2127_s21 = int_to_ptr.hbm [resolvable:$true] %s2126_s21 }
 0x241   : > { %1359 = vrot.lane.b32.xlu2 %v2727_v6, %s2495_s12  ;;  %1180 = vrot.lane.b32.xlu0 %v2729_v7, %s2496_s25 }
 0x242   : > { %1183 = vrot.lane.b32.xlu1 %v2727_v6, %s2496_s25  ;;  %s2426_s25 = sshra.s32 %s2127_s21, 4  ;;  %s2427_s25 = int_to_ptr.hbm [resolvable:$true] %s2426_s25 }
 0x243   : > { %s2428_s17 = scalar_lea.hbm %s2427_s25, 1  ;;  %p2433_p3 = scmp.lt.s32.totalorder %s2427_s25, %s2950_s10 }
 0x244   : > { %p2429_p0 = scmp.ne.s32.totalorder %s2427_s25, %s2428_s17  ;;  %p2434_p4 = scmp.lt.s32.totalorder %s2432_s11, %s2428_s17 }
 0x246   : > { %p2430_p1 = pnand %p2429_p0, %p2593_p5  ;;  %p2435_p7 = por %p2434_p4, %p2433_p3 }
 0x248   : > { %p2431_p2 = pneg %p2430_p1 }
 0x249   : > { %1295 = vrot.lane.b32.xlu2 %v2729_v7, %s2497_s26  ;;  %1361 = vrot.lane.b32.xlu0 %v2729_v7, %s2495_s12 }
 0x24a   : > { %1293 = vrot.lane.b32.xlu1 %v2727_v6, %s2497_s26  ;;  %p2436_p8 = pnand %p2435_p7, %p2431_p2 }
 0x251   : > { %1425 = vrot.lane.b32.xlu2 %v2727_v6, %s2498_s27  ;;  %1491 = vrot.lane.b32.xlu0 %v2727_v6, %s2499_s28 }
 0x252   : > { %1493 = vrot.lane.b32.xlu1 %v2729_v7, %s2499_s28  ;;  %s368_s28 = sand.u32 1, %s2470_s14  }
 0x253   : > { %s369_s30 = scalar_lea.vmem [#allocation5], %s368_s28  ;;  %s2114_s12 = scalar_lea.sflag [#allocation4], %s368_s28 }
 0x254   : > { %s2124_s20 = sshll.u32 %s369_s30, 4  ;;  %s2125_s20 = int_to_ptr.vmem [resolvable:$true] %s2124_s20 }
 0x259   : > { %1427 = vrot.lane.b32.xlu0 %v2729_v7, %s2498_s27 }
 0x25a   : > { %1560 = vperm.xlu1 %2370, %v1557_v8   ;;  %v1505_v8 = vperm.slane %v2263_v5, 1 }
 0x28b   : > { %v1115_v9 = vpop.permute.xlu2 %1114 }
 0x293   : > { %v992_v22 = vpop.permute.xlu2 %991 }
 0x29b   : > { %v1360_v40 = vpop.permute.xlu2 %1359 }
 0x2a3   : > { %v1008_v13 = vpop.permute.xlu0 %1007  ;;  %v1296_v58 = vpop.permute.xlu2 %1295 }
 0x2a4   : > { %v1011_v14 = vpop.permute.xlu1 %1010 }
 0x2a5   : > { %v1013_v15 = vsel %vm1012_vm9, %v1011_v14, %v1008_v13  ;;  %v1016_v16 = vsel %vm1012_vm9, %v1008_v13, %v1011_v14 }
 0x2a6   : > { %v1024_v17 = vmul.f32 %v1020_v11, %v1016_v16  ;;  %v1025_v18 = vmul.f32 %v1021_v12, %v1013_v15  ;;  %v2259_v15 = vld [vmem:[%s2942_s2 + $0xe] sm:$0x3]  ;;  %v2264_v16 = vld [vmem:[%s2945_s5 + $0x40] sm:$0xff] }
 0x2a8   : > { %1046 = vmatpush.msra.mxu2 %v1024_v17  ;;  %1066 = vmatpush.msra.mxu3 %v1025_v18  ;;  %v1438_v17 = vperm.slane %v2259_v15, 0  ;;  %v1439_v18 = vperm.slane %v2259_v15, 1  ;;  %v1618_v15 = vld [vmem:[#allocation2 + $0xc8] sm:$0xff] }
 0x2a9   : > { %2236 = vmatmul.msk.f32.vlgmr.msra.gmra.mxu2 %vm420_vm3, %v2235_v19  ;;  %2237 = vmatmul.msk.f32.vlgmr.msra.gmra.mxu3 %vm420_vm3, %v2235_v19 }
 0x2ab   : > { %v1118_v27 = vpop.permute.xlu0 %1117  ;;  %v1426_v19 = vpop.permute.xlu2 %1425 }
 0x2ac   : > { %v1120_v28 = vsel %vm1119_vm10, %v1118_v27, %v1115_v9  ;;  %v1123_v29 = vsel %vm1119_vm10, %v1115_v9, %v1118_v27  ;;  %v988_v30 = vpop.permute.xlu1 %987 }
 0x2ad   : > { %v1131_v31 = vmul.f32 %v1127_v23, %v1123_v29  ;;  %v1132_v32 = vmul.f32 %v1128_v24, %v1120_v28  ;;  %v994_v33 = vsel %vm993_vm11, %v992_v22, %v988_v30  ;;  %v997_v34 = vsel %vm993_vm11, %v988_v30, %v992_v22 }
 0x2ae   : > { %v1004_v35 = vmul.f32 %v1000_v25, %v997_v34  ;;  %v1005_v36 = vmul.f32 %v1001_v26, %v994_v33  ;;  %v2260_v25 = vld [vmem:[%s2945_s5 + $0x38] sm:$0xff] }
 0x2af   : > { %1153 = vmatpush.msrb.mxu2 %v1131_v31  ;;  %1173 = vmatpush.msrb.mxu3 %v1132_v32 }
 0x2b0   : > { %1089 = vmatpush.msrb.mxu0 %v1004_v35  ;;  %1109 = vmatpush.msrb.mxu1 %v1005_v36 }
 0x2b1   : > { %2242 = vmatmul.msk.f32.vlgmr.msrb.gmra.mxu2 %vm420_vm3, %v2241_v37  ;;  %2243 = vmatmul.msk.f32.vlgmr.msrb.gmra.mxu3 %vm420_vm3, %v2241_v37 }
 0x2b2   : > { %1266 = vmatpush.msra.mxu2 %v2727_v6  ;;  %1286 = vmatpush.msra.mxu3 %v2729_v7  ;;  %v2252_v6 = vld [vmem:[%s2945_s5 + $0x28] sm:$0xff]  ;;  %v1504_v7 = vperm.slane %v2263_v5, 0  ;;  %v1623_v5 = vld [vmem:[#allocation2 + $0xf0] sm:$0xff] }
 0x2b3   : > { %2238 = vmatmul.msk.f32.vlgmr.msrb.gmra.mxu0 %vm420_vm3, %v1006_v39  ;;  %2239 = vmatmul.msk.f32.vlgmr.msrb.gmra.mxu1 %vm420_vm3, %v1006_v39  ;;  %v1181_v43 = vpop.permute.xlu0 %1180 }
 0x2b4   : > { %v1184_v44 = vpop.permute.xlu1 %1183 }
 0x2b5   : > { %v1186_v45 = vsel %vm1185_vm12, %v1184_v44, %v1181_v43  ;;  %v1189_v46 = vsel %vm1185_vm12, %v1181_v43, %v1184_v44 }
 0x2b6   : > { %v1197_v47 = vmul.f32 %v1193_v41, %v1189_v46  ;;  %v1198_v48 = vmul.f32 %v1194_v42, %v1186_v45 }
 0x2b8   : > { %1219 = vmatpush.msra.mxu0 %v1197_v47  ;;  %1239 = vmatpush.msra.mxu1 %v1198_v48 }
 0x2b9   : > { %2249 = vmatmul.msk.f32.vlgmr.msra.gmra.mxu2 %vm420_vm3, %v2248_v49  ;;  %2250 = vmatmul.msk.f32.vlgmr.msra.gmra.mxu3 %vm420_vm3, %v2248_v49 }
 0x2bb   : > { %2246 = vmatmul.msk.f32.vlgmr.msra.gmra.mxu0 %vm420_vm3, %v2245_v52  ;;  %2247 = vmatmul.msk.f32.vlgmr.msra.gmra.mxu1 %vm420_vm3, %v2245_v52  ;;  %v1362_v57 = vpop.permute.xlu0 %1361 }
 0x2bc   : > { %v1364_v59 = vsel %vm1363_vm13, %v1360_v40, %v1362_v57  ;;  %v1368_v60 = vsel %vm1363_vm13, %v1362_v57, %v1360_v40  ;;  %v1294_v61 = vpop.permute.xlu1 %1293 }
 0x2bd   : > { %v1376_v62 = vmul.f32 %v1372_v53, %v1364_v59  ;;  %v1377_v63 = vmul.f32 %v1373_v54, %v1368_v60  ;;  %v1298_v0 = vsel %vm1297_vm14, %v1294_v61, %v1296_v58  ;;  %v1302_v1 = vsel %vm1297_vm14, %v1296_v58, %v1294_v61 }
 0x2be   : > { %v1310_v2 = vmul.f32 %v1306_v55, %v1298_v0  ;;  %v1311_v3 = vmul.f32 %v1307_v56, %v1302_v1 }
 0x2bf   : > { %1398 = vmatpush.msrb.mxu2 %v1376_v62  ;;  %1418 = vmatpush.msrb.mxu3 %v1377_v63 }
 0x2c0   : > { %1332 = vmatpush.msrb.mxu0 %v1310_v2  ;;  %1352 = vmatpush.msrb.mxu1 %v1311_v3  ;;  %v1608_v2 = vld [vmem:[#allocation2 + $0x78] sm:$0xff] }
 0x2c1   : > { %2257 = vmatmul.msk.f32.vlgmr.msrb.gmra.mxu2 %vm420_vm3, %v2256_v4  ;;  %2258 = vmatmul.msk.f32.vlgmr.msrb.gmra.mxu3 %vm420_vm3, %v2256_v4  ;;  %v1624_v3 = vld [vmem:[#allocation2 + $0xf8] sm:$0xff]  ;;  %v1607_v4 = vld [vmem:[#allocation2 + $0x70] sm:$0xff] }
 0x2c3   : > { %2253 = vmatmul.msk.f32.vlgmr.msrb.gmra.mxu0 %vm420_vm3, %v2252_v6  ;;  %2254 = vmatmul.msk.f32.vlgmr.msrb.gmra.mxu1 %vm420_vm3, %v2252_v6  ;;  %v1492_v9 = vpop.permute.xlu0 %1491  ;;  %v1606_v6 = vld [vmem:[#allocation2 + $0x68] sm:$0xff] }
 0x2c4   : > { %v1494_v10 = vpop.permute.xlu1 %1493 }
 0x2c5   : > { %v1496_v11 = vsel %vm1495_vm15, %v1492_v9, %v1494_v10  ;;  %v1500_v12 = vsel %vm1495_vm15, %v1494_v10, %v1492_v9  ;;  %v1621_v9 = vld [vmem:[#allocation2 + $0xe0] sm:$0xff]  ;;  %v1604_v10 = vld [vmem:[#allocation2 + $0x58] sm:$0xff] }
 0x2c6   : > { %v1508_v13 = vmul.f32 %v1504_v7, %v1496_v11  ;;  %v1509_v14 = vmul.f32 %v1505_v8, %v1500_v12  ;;  %v1622_v7 = vld [vmem:[#allocation2 + $0xe8] sm:$0xff]  ;;  %v1605_v8 = vld [vmem:[#allocation2 + $0x60] sm:$0xff]  ;;  %v1620_v11 = vld [vmem:[#allocation2 + $0xd8] sm:$0xff] }
 0x2c7   : > { %v1603_v12 = vld [vmem:[#allocation2 + $0x50] sm:$0xff] }
 0x2c8   : > { %1530 = vmatpush.msra.mxu2 %v1508_v13  ;;  %1550 = vmatpush.msra.mxu3 %v1509_v14  ;;  %v1619_v13 = vld [vmem:[#allocation2 + $0xd0] sm:$0xff]  ;;  %v1602_v14 = vld [vmem:[#allocation2 + $0x48] sm:$0xff] }
 0x2c9   : > { %2265 = vmatmul.msk.f32.vlgmr.msra.gmra.mxu2 %vm420_vm3, %v2264_v16  ;;  %2266 = vmatmul.msk.f32.vlgmr.msra.gmra.mxu3 %vm420_vm3, %v2264_v16  ;;  %v1601_v16 = vld [vmem:[#allocation2 + $0x40] sm:$0xff] }
 0x2cb   : > { %v1428_v20 = vpop.permute.xlu0 %1427 }
 0x2cc   : > { %v1430_v21 = vsel %vm1429_vm0, %v1426_v19, %v1428_v20  ;;  %v1434_v22 = vsel %vm1429_vm0, %v1428_v20, %v1426_v19  ;;  %v1561_v60 = vpop.permute.xlu1 %1560  ;;  %v1616_v19 = vld [vmem:[#allocation2 + $0xb8] sm:$0xff]  ;;  %v1599_v20 = vld [vmem:[#allocation2 + $0x30] sm:$0xff] }
 0x2cd   : > { %v1442_v23 = vmul.f32 %v1438_v17, %v1430_v21  ;;  %v1443_v24 = vmul.f32 %v1439_v18, %v1434_v22  ;;  %v1617_v17 = vld [vmem:[#allocation2 + $0xc0] sm:$0xff]  ;;  %v1600_v18 = vld [vmem:[#allocation2 + $0x38] sm:$0xff]  ;;  %v1615_v21 = vld [vmem:[#allocation2 + $0xb0] sm:$0xff] }
 0x2ce   : > { %v1598_v22 = vld [vmem:[#allocation2 + $0x28] sm:$0xff] }
 0x2cf   : > { %1464 = vmatpush.msra.mxu0 %v1442_v23  ;;  %1484 = vmatpush.msra.mxu1 %v1443_v24  ;;  %v1614_v23 = vld [vmem:[#allocation2 + $0xa8] sm:$0xff]  ;;  %v1597_v24 = vld [vmem:[#allocation2 + $0x20] sm:$0xff] }
 0x2d0   : > { %2261 = vmatmul.msk.f32.vlgmr.msra.gmra.mxu0 %vm420_vm3, %v2260_v25  ;;  %2262 = vmatmul.msk.f32.vlgmr.msra.gmra.mxu1 %vm420_vm3, %v2260_v25  ;;  %v1613_v25 = vld [vmem:[#allocation2 + $0xa0] sm:$0xff] }
 0x2d1   : > { %1625 = vmatpush.msrb.mxu0 %v1608_v2  ;;  %1645 = vmatpush.msrb.mxu1 %v1624_v3 }
 0x2d3   : > { %1626 = vmatpush.msrb.mxu0 %v1607_v4  ;;  %1646 = vmatpush.msrb.mxu1 %v1623_v5  ;;  %v2278_v4 = vld [vmem:[%s2948_s8 + $0x30] sm:$0xff] }
 0x2d5   : > { %1627 = vmatpush.msrb.mxu0 %v1606_v6  ;;  %1647 = vmatpush.msrb.mxu1 %v1622_v7 }
 0x2d7   : > { %1628 = vmatpush.msrb.mxu0 %v1605_v8  ;;  %1648 = vmatpush.msrb.mxu1 %v1621_v9  ;;  %v2288_v8 = vld [vmem:[%s2948_s8 + $0x58] sm:$0xff] }
 0x2d9   : > { %1629 = vmatpush.msrb.mxu0 %v1604_v10  ;;  %1649 = vmatpush.msrb.mxu1 %v1620_v11  ;;  %v2286_v11 = vld [vmem:[%s2948_s8 + $0x50] sm:$0xff] }
 0x2db   : > { %1630 = vmatpush.msrb.mxu0 %v1603_v12  ;;  %1650 = vmatpush.msrb.mxu1 %v1619_v13  ;;  %v2296_v13 = vld [vmem:[%s2948_s8 + $0x78] sm:$0xff] }
 0x2dd   : > { %1631 = vmatpush.msrb.mxu0 %v1602_v14  ;;  %1651 = vmatpush.msrb.mxu1 %v1618_v15  ;;  %v2294_v15 = vld [vmem:[%s2948_s8 + $0x70] sm:$0xff] }
 0x2df   : > { %1632 = vmatpush.msrb.mxu0 %v1601_v16  ;;  %1652 = vmatpush.msrb.mxu1 %v1617_v17 }
 0x2e1   : > { %1633 = vmatpush.msrb.mxu0 %v1600_v18  ;;  %1653 = vmatpush.msrb.mxu1 %v1616_v19 }
 0x2e3   : > { %1634 = vmatpush.msrb.mxu0 %v1599_v20  ;;  %1654 = vmatpush.msrb.mxu1 %v1615_v21 }
 0x2e5   : > { %1635 = vmatpush.msrb.mxu0 %v1598_v22  ;;  %1655 = vmatpush.msrb.mxu1 %v1614_v23 }
 0x2e7   : > { %1636 = vmatpush.msrb.mxu0 %v1597_v24  ;;  %1656 = vmatpush.msrb.mxu1 %v1613_v25 }
 0x32c   : > { %v1048_v26 = vpop.f32.mrf.mxu2  ;;  %v1068_v27 = vpop.f32.mrf.mxu3 }
 0x330   : > { %v1091_v28 = vpop.f32.mrf.mxu0  ;;  %v1111_v29 = vpop.f32.mrf.mxu1 }
 0x331   : > { %v1092_v36 = vadd.f32 %v1091_v28, %v1048_v26  ;;  %v1112_v37 = vadd.f32 %v1111_v29, %v1068_v27  ;;  %v1596_v26 = vld [vmem:[#allocation2 + $0x18] sm:$0xff] }
 0x332   : > { %v1612_v27 = vld [vmem:[#allocation2 + $0x98] sm:$0xff]  ;;  %1637 = vmatpush.msrb.mxu0 %v1596_v26 }
 0x333   : > { %1657 = vmatpush.msrb.mxu1 %v1612_v27 }
 0x334   : > { %v1155_v30 = vpop.f32.mrf.mxu2  ;;  %v1175_v31 = vpop.f32.mrf.mxu3 }
 0x335   : > { %v1178_v38 = vadd.f32 %v1155_v30, %v1092_v36  ;;  %v1179_v39 = vadd.f32 %v1175_v31, %v1112_v37  ;;  %v1595_v36 = vld [vmem:[#allocation2 + $0x10] sm:$0xff] }
 0x336   : > { %v1611_v37 = vld [vmem:[#allocation2 + $0x90] sm:$0xff]  ;;  %1638 = vmatpush.msrb.mxu0 %v1595_v36 }
 0x337   : > { %1658 = vmatpush.msrb.mxu1 %v1611_v37 }
 0x338   : > { %v1221_v32 = vpop.f32.mrf.mxu0  ;;  %v1241_v33 = vpop.f32.mrf.mxu1 }
 0x339   : > { %v1244_v40 = vadd.f32 %v1221_v32, %v1178_v38  ;;  %v1245_v41 = vadd.f32 %v1241_v33, %v1179_v39  ;;  %v1594_v38 = vld [vmem:[#allocation2 + $0x8] sm:$0xff] }
 0x33a   : > { %v1610_v39 = vld [vmem:[#allocation2 + $0x88] sm:$0xff]  ;;  %1639 = vmatpush.msrb.mxu0 %v1594_v38 }
 0x33b   : > { %1659 = vmatpush.msrb.mxu1 %v1610_v39 }
 0x33c   : > { %v1268_v34 = vpop.f32.mrf.mxu2  ;;  %v1288_v35 = vpop.f32.mrf.mxu3 }
 0x33d   : > { %v1291_v46 = vadd.f32 %v1268_v34, %v1244_v40  ;;  %v1292_v47 = vadd.f32 %v1288_v35, %v1245_v41  ;;  %v1593_v40 = vld [vmem:[#allocation2] sm:$0xff] }
 0x33e   : > { %v1609_v41 = vld [vmem:[#allocation2 + $0x80] sm:$0xff]  ;;  %1640 = vmatpush.msrb.mxu0 %v1593_v40 }
 0x33f   : > { %1660 = vmatpush.msrb.mxu1 %v1609_v41 }
 0x340   : > { %v1334_v44 = vpop.f32.mrf.mxu0  ;;  %v1354_v45 = vpop.f32.mrf.mxu1 }
 0x341   : > { %v1357_v48 = vadd.f32 %v1334_v44, %v1291_v46  ;;  %v1358_v49 = vadd.f32 %v1354_v45, %v1292_v47 }
 0x344   : > { %v1400_v42 = vpop.f32.mrf.mxu2  ;;  %v1420_v43 = vpop.f32.mrf.mxu3 }
 0x345   : > { %v1423_v50 = vadd.f32 %v1400_v42, %v1357_v48  ;;  %v1424_v51 = vadd.f32 %v1420_v43, %v1358_v49  ;;  %v1697_v49 = vld [vmem:[%s2948_s8] sm:$0xff] }
 0x346   : > { %1741 = vmatpush.msrb.mxu3 %v1697_v49 }
 0x34c   : > { %v1532_v52 = vpop.f32.mrf.mxu2  ;;  %v1552_v53 = vpop.f32.mrf.mxu3 }
 0x34d   : > { %v1466_v54 = vpop.f32.mrf.mxu0  ;;  %v1486_v55 = vpop.f32.mrf.mxu1 }
 0x34e   : > { %v1489_v56 = vadd.f32 %v1466_v54, %v1423_v50  ;;  %v1490_v57 = vadd.f32 %v1486_v55, %v1424_v51  ;;  %v2272_v54 = vld [vmem:[%s2948_s8 + $0x18] sm:$0xff]  ;;  %v2270_v55 = vld [vmem:[%s2948_s8 + $0x10] sm:$0xff] }
 0x34f   : > { %1792 = vmatpush.msra.mxu3 %v2272_v54 }
 0x350   : > { %v1555_v58 = vadd.f32 %v1532_v52, %v1489_v56  ;;  %v1556_v59 = vadd.f32 %v1552_v53, %v1490_v57  ;;  %v2267_v53 = vld [vmem:[%s2948_s8 + $0x8] sm:$0xff]  ;;  %v2282_v56 = vld [vmem:[%s2948_s8 + $0x40] sm:$0xff] }
 0x351   : > { %1719 = vmatpush.msrb.mxu2 %v2267_v53  ;;  %v2284_v57 = vld [vmem:[%s2948_s8 + $0x48] sm:$0xff]  ;;  %1922 = vmatpush.msra.mxu0 %v2282_v56 }
 0x352   : > { %v2829_v61 = vadd.f32 %v1561_v60, %v1555_v58  ;;  %v2831_v62 = vadd.f32 %v1561_v60, %v1556_v59  ;;  %1948 = vmatpush.msra.mxu1 %v2284_v57  ;;  %v2276_v58 = vld [vmem:[%s2948_s8 + $0x28] sm:$0xff] }
 0x353   : > { %1766 = vmatpush.msra.mxu2 %v2270_v55 }
 0x354   : > { %v1565_v63 = vmax.f32 %v2829_v61, 0.0  ;;  %v1566_v0 = vmax.f32 %v2831_v62, 0.0  ;;  %v2274_v61 = vld [vmem:[%s2948_s8 + $0x20] sm:$0xff] }
 0x355   : > { %v2290_v62 = vld [vmem:[%s2948_s8 + $0x60] sm:$0xff] }
 0x356   : > { %v2371_v1 = vpack.i.bf16 %v1566_v0, %v1565_v63 }
 0x358   : > { %2372 = vrot.lane.b32.xlu2 %v2371_v1, %s2497_s26  ;;  %v2280_v1 = vld [vmem:[%s2948_s8 + $0x38] sm:$0xff] }
 0x3b2   : > { %v2373_v28 = vpop.permute.xlu2 %2372 }
 0x3b3   : > { %v2375_v29 = vunpack.i.h.bf16 %v2373_v28  ;;  %v2374_v30 = vunpack.i.l.bf16 %v2373_v28 }
 0x3b5   : > { %v1573_v31 = vsel %vm1297_vm14, %v2374_v30, %v2375_v29  ;;  %v1577_v32 = vsel %vm1297_vm14, %v2375_v29, %v2374_v30 }
 0x3b6   : > { %v1578_v33 = vmax.f32 %v1565_v63, %v1573_v31  ;;  %v1579_v34 = vmax.f32 %v1566_v0, %v1577_v32  ;;  %v2292_v63 = vld [vmem:[%s2948_s8 + $0x68] sm:$0xff] }
 0x3b8   : > { %v2376_v35 = vpack.i.bf16 %v1579_v34, %v1578_v33 }
 0x3ba   : > { %2377 = vrot.lane.b32.xlu0 %v2376_v35, %s2498_s27 }
 0x42c   : > { %v2378_v42 = vpop.permute.xlu0 %2377 }
 0x42d   : > { %v2380_v43 = vunpack.i.h.bf16 %v2378_v42  ;;  %v2379_v44 = vunpack.i.l.bf16 %v2378_v42 }
 0x42f   : > { %v1586_v45 = vsel %vm1429_vm0, %v2379_v44, %v2380_v43  ;;  %v1590_v46 = vsel %vm1429_vm0, %v2380_v43, %v2379_v44 }
 0x430   : > { %v1591_v47 = vmax.f32 %v1578_v33, %v1586_v45  ;;  %v1592_v48 = vmax.f32 %v1579_v34, %v1590_v46 }
 0x432   : > { %1641 = vmatmul.f32.vlgmr.msrb.gmra.mxu0 %v1591_v47  ;;  %1661 = vmatmul.f32.vlgmr.msrb.gmra.mxu1 %v1592_v48 }
 0x433   : > { %2026 = vmatpush.msrb.mxu0 %v2290_v62  ;;  %2052 = vmatpush.msrb.mxu1 %v2292_v63 }
 0x4af   : > { %v1642_v50 = vpop.f32.mrf.mxu0  ;;  %v1662_v51 = vpop.f32.mrf.mxu1 }
 0x4b0   : > { %v1663_v52 = vadd.f32 %v1662_v51, %v1642_v50  ;;  %v2110_v50 = vld [vmem:[%s2949_s9] sm:$0x1] }
 0x4b2   : > { %1665 = vxpose.xlu1.b32.start.end [1/1] (short) (narrow) %v1663_v52, 16 }
 0x556   : > { %v1681_v59 = vpop.trf.xlu1 }
 0x557   : > { %2269 = vmatmul.msk.f32.vlgmr.msrb.gmra.mxu3 %vm420_vm3, %v1681_v59  ;;  %v1701_v60 = vrot.slane %v1681_v59, 1  ;;  %v1774_v0 = vrot.slane %v1681_v59, 3  ;;  %v1748_v3 = vrot.slane %v1681_v59, 2  ;;  %v1826_v7 = vrot.slane %v1681_v59, 5 }
 0x558   : > { %1844 = vmatpush.msrb.mxu3 %v2276_v58  ;;  %v1800_v10 = vrot.slane %v1681_v59, 4  ;;  %v1878_v12 = vrot.slane %v1681_v59, 7  ;;  %v1852_v14 = vrot.slane %v1681_v59, 6 }
 0x559   : > { %2268 = vmatmul.msk.f32.vlgmr.msrb.gmra.mxu2 %vm420_vm3, %v1701_v60 }
 0x55a   : > { %1818 = vmatpush.msrb.mxu2 %v2274_v61 }
 0x55e   : > { %v1682_v2 = vpop.trf.xlu1 }
 0x55f   : > { %2273 = vmatmul.msk.f32.vlgmr.msra.gmra.mxu3 %vm420_vm3, %v1774_v0  ;;  %2283 = vmatmul.msk.f32.vlgmr.msra.gmra.mxu0 %vm420_vm3, %v1682_v2  ;;  %v1930_v5 = vrot.slane %v1682_v2, 1  ;;  %v2008_v6 = vrot.slane %v1682_v2, 4  ;;  %v2034_v9 = vrot.slane %v1682_v2, 5  ;;  %v1982_v16 = vrot.slane %v1682_v2, 3 }
 0x560   : > { %1896 = vmatpush.msra.mxu3 %v2280_v1  ;;  %v1956_v17 = vrot.slane %v1682_v2, 2  ;;  %v2086_v18 = vrot.slane %v1682_v2, 7  ;;  %v2060_v19 = vrot.slane %v1682_v2, 6 }
 0x561   : > { %2271 = vmatmul.msk.f32.vlgmr.msra.gmra.mxu2 %vm420_vm3, %v1748_v3  ;;  %2285 = vmatmul.msk.f32.vlgmr.msra.gmra.mxu1 %vm420_vm3, %v1930_v5 }
 0x562   : > { %1870 = vmatpush.msra.mxu2 %v2278_v4 }
 0x567   : > { %2277 = vmatmul.msk.f32.vlgmr.msrb.gmra.mxu3 %vm420_vm3, %v1826_v7  ;;  %2291 = vmatmul.msk.f32.vlgmr.msrb.gmra.mxu0 %vm420_vm3, %v2008_v6 }
 0x568   : > { %2000 = vmatpush.msrb.mxu3 %v2288_v8 }
 0x569   : > { %2275 = vmatmul.msk.f32.vlgmr.msrb.gmra.mxu2 %vm420_vm3, %v1800_v10  ;;  %2293 = vmatmul.msk.f32.vlgmr.msrb.gmra.mxu1 %vm420_vm3, %v2034_v9 }
 0x56a   : > { %1974 = vmatpush.msrb.mxu2 %v2286_v11 }
 0x56f   : > { %2281 = vmatmul.msk.f32.vlgmr.msra.gmra.mxu3 %vm420_vm3, %v1878_v12 }
 0x570   : > { %2104 = vmatpush.msra.mxu3 %v2296_v13 }
 0x571   : > { %2279 = vmatmul.msk.f32.vlgmr.msra.gmra.mxu2 %vm420_vm3, %v1852_v14 }
 0x572   : > { %2078 = vmatpush.msra.mxu2 %v2294_v15 }
 0x577   : > { %2289 = vmatmul.msk.f32.vlgmr.msrb.gmra.mxu3 %vm420_vm3, %v1982_v16 }
 0x579   : > { %2287 = vmatmul.msk.f32.vlgmr.msrb.gmra.mxu2 %vm420_vm3, %v1956_v17 }
 0x57f   : > { %2297 = vmatmul.msk.f32.vlgmr.msra.gmra.mxu3 %vm420_vm3, %v2086_v18 }
 0x581   : > { %2295 = vmatmul.msk.f32.vlgmr.msra.gmra.mxu2 %vm420_vm3, %v2060_v19 }
 0x5da   : > { %v1743_v20 = vpop.f32.mrf.mxu3 }
 0x5dc   : > { %v1721_v21 = vpop.f32.mrf.mxu2  ;;  %v1924_v34 = vpop.f32.mrf.mxu0 }
 0x5dd   : > { %v1744_v24 = vadd.f32 %v1743_v20, %v1721_v21 }
 0x5de   : > { %v1950_v36 = vpop.f32.mrf.mxu1 }
 0x5e2   : > { %v1794_v22 = vpop.f32.mrf.mxu3 }
 0x5e4   : > { %v1768_v23 = vpop.f32.mrf.mxu2  ;;  %v2028_v43 = vpop.f32.mrf.mxu0 }
 0x5e5   : > { %v1771_v25 = vadd.f32 %v1768_v23, %v1744_v24 }
 0x5e6   : > { %v2054_v45 = vpop.f32.mrf.mxu1 }
 0x5e7   : > { %v1797_v28 = vadd.f32 %v1794_v22, %v1771_v25 }
 0x5ea   : > { %v1846_v26 = vpop.f32.mrf.mxu3 }
 0x5ec   : > { %v1820_v27 = vpop.f32.mrf.mxu2 }
 0x5ed   : > { %v1823_v29 = vadd.f32 %v1820_v27, %v1797_v28 }
 0x5ef   : > { %v1849_v31 = vadd.f32 %v1846_v26, %v1823_v29 }
 0x5f2   : > { %v1898_v30 = vpop.f32.mrf.mxu3 }
 0x5f4   : > { %v1872_v32 = vpop.f32.mrf.mxu2 }
 0x5f5   : > { %v1875_v33 = vadd.f32 %v1872_v32, %v1849_v31 }
 0x5f7   : > { %v1901_v35 = vadd.f32 %v1898_v30, %v1875_v33 }
 0x5f9   : > { %v1927_v37 = vadd.f32 %v1924_v34, %v1901_v35 }
 0x5fa   : > { %v2002_v39 = vpop.f32.mrf.mxu3 }
 0x5fb   : > { %v1953_v38 = vadd.f32 %v1950_v36, %v1927_v37 }
 0x5fc   : > { %v1976_v40 = vpop.f32.mrf.mxu2 }
 0x5fd   : > { %v1979_v41 = vadd.f32 %v1976_v40, %v1953_v38 }
 0x5ff   : > { %v2005_v42 = vadd.f32 %v2002_v39, %v1979_v41 }
 0x601   : > { %v2031_v44 = vadd.f32 %v2028_v43, %v2005_v42 }
 0x602   : > { %v2106_v49 = vpop.f32.mrf.mxu3 }
 0x603   : > { %v2057_v46 = vadd.f32 %v2054_v45, %v2031_v44 }
 0x604   : > { %v2080_v47 = vpop.f32.mrf.mxu2 }
 0x605   : > { %v2083_v48 = vadd.f32 %v2080_v47, %v2057_v46 }
 0x607   : > { %v2109_v51 = vadd.f32 %v2106_v49, %v2083_v48 }
 0x609   : > { %v2111_v52 = vadd.f32 %v2110_v50, %v2109_v51 }
 0x60b   : > { %2112 = vst [vmem:[%s369_s30] sm:$0x1] %v2111_v52 }
 0x60c   : > { %2439 = shalt.err (!%p2436_p8)
}
 0x60d   : > { %2304 = dma.vmem_to_hbm [thread:$0]  (%p2593_p5), %s2125_s20, 16, %s2127_s21, %s2114_s12  }
 0x60e PF: > { %p2316_p9 = scmp.ge.s32.totalorder %s2478_s16, 2  ;;  %s2138_s28 = sand.u32 1, %s2466_s13  }
 0x60f   : > { %s2139_s29 = scalar_lea.sflag [#allocation4], %s2138_s28 }
 0x610   : > { %p2311_p10 = pnand %p2316_p9, %p2597_p6 }
 0x612   : > { %p2312_p11 = pneg %p2311_p10 }
 0x614   : > { %2461 = dma.done.wait (%p2312_p11), %s2139_s29, 16  }
 0x615   : > { %2463 = vsyncadd (%p2312_p11), %s2139_s29, 4294967280  ;;  %p21_p12 = scmp.ge.s32.totalorder %s2580_s19, 4   ;;  %s2955_s13 = smov %s2470_s14 }
 0x616   : > { %s2956_s14 = smov %s2474_s15  ;;  %s2957_s15 = smov %s2591_s22 }
 0x617   : > { %s2958_s16 = smov %s2580_s19  ;;  %23 = sbr.rel (!%p21_p12) target bundleno = 6 (0x6), region = 145 }
 0x61c   :  { %2144 = vsyncpa [#allocation3], 1 }
 0x61d   :  { %2146 = vsyncpa [#allocation3 + $0x1], 1 }
 0x61e   :  { %2147 = vsyncpa [#allocation4], 1 }
 0x61f   :  { %2149 = vsyncpa [#allocation4 + $0x1], 1 }

</bundles_post_ra>
